<compile_context>
chip_gen: v6e
topology: v6e:2x2x1
jax: 0.10.0
libtpu: 0.0.40
codegen_flags: <defaults>
</compile_context>

<pallas_src>
import jax
import jax.numpy as jnp
from jax.experimental import pallas as pl
from jax.experimental.pallas import tpu as pltpu

INPUT_CHANNEL = 6
NUM_DIVISION = 4
KERNEL_SIZE = 2
BN_EPS = 1e-5


# ---------------------------------------------------------------------------
# Fused kernel
# ---------------------------------------------------------------------------
def _make_kernel(T, K):
    """Kernel over one tile of T (B*P) rows, each carrying K points."""
    npd = K // NUM_DIVISION

    def kernel(x_ref, w1_ref, st1_ref, w2_ref, st2_ref,
               wc1_ref, stc1_ref, wc2_ref, stc2_ref, wc3_ref, stc3_ref,
               we_ref, be_ref, o_ref):
        # ---- liftup: Linear(6,64)+BN+ReLU -> Linear(64,128)+BN+ReLU -------
        x = x_ref[...].astype(jnp.bfloat16)                       # (T*K, 6)
        st1 = st1_ref[...]
        h = jnp.dot(x, w1_ref[...], preferred_element_type=jnp.float32)
        h = jnp.maximum(h * st1[0:1] + st1[1:2], 0.0)             # (T*K, 64) f32
        st2 = st2_ref[...]
        h = jnp.dot(h.astype(jnp.bfloat16), w2_ref[...],
                    preferred_element_type=jnp.float32)
        h = jnp.maximum(h * st2[0:1] + st2[1:2], 0.0)             # (T*K, 128) f32

        # ---- F.max_pool2d(kernel=(1, K/4)) over the point axis ------------
        h3 = h.reshape(T, K, 128)
        p = [jnp.max(h3[:, j * npd:(j + 1) * npd, :], axis=1)
             for j in range(NUM_DIVISION)]                        # 4 x (T, 128)

        # ---- conv1: Conv2d(128,128,(1,2)) + BN + ReLU, width 4 -> 3 -------
        # Two-tap conv as one wide matmul: adjacent positions concatenated
        # along channels, output positions stacked along M.
        x1 = jnp.concatenate(
            [jnp.concatenate([p[j], p[j + 1]], axis=1) for j in range(3)],
            axis=0).astype(jnp.bfloat16)                          # (3T, 256)
        stc1 = stc1_ref[...]
        c1 = jnp.dot(x1, wc1_ref[...], preferred_element_type=jnp.float32)
        c1 = jnp.maximum(c1 * stc1[0:1] + stc1[1:2], 0.0)         # (3T, 128)

        # ---- conv2: Conv2d(128,256,(1,2)) + BN + ReLU, width 3 -> 2 -------
        x2 = jnp.concatenate(
            [jnp.concatenate([c1[0:T], c1[T:2 * T]], axis=1),
             jnp.concatenate([c1[T:2 * T], c1[2 * T:3 * T]], axis=1)],
            axis=0).astype(jnp.bfloat16)                          # (2T, 256)
        stc2 = stc2_ref[...]
        c2 = jnp.dot(x2, wc2_ref[...], preferred_element_type=jnp.float32)
        c2 = jnp.maximum(c2 * stc2[0:1] + stc2[1:2], 0.0)         # (2T, 256)

        # ---- conv3: Conv2d(256,512,(1,2)) + BN + ReLU, width 2 -> 1 -------
        x3 = jnp.concatenate([c2[0:T], c2[T:2 * T]],
                             axis=1).astype(jnp.bfloat16)         # (T, 512)
        stc3 = stc3_ref[...]
        c3 = jnp.dot(x3, wc3_ref[...], preferred_element_type=jnp.float32)
        c3 = jnp.maximum(c3 * stc3[0:1] + stc3[1:2], 0.0)         # (T, 512)

        # torch.max over dim=2 acts on a size-1 width here -> identity.
        # ---- embed: Linear(512, num_dim_token), lane-dense (128-padded) ---
        o_ref[...] = (jnp.dot(c3.astype(jnp.bfloat16), we_ref[...],
                              preferred_element_type=jnp.float32)
                      + be_ref[...])

    return kernel


# ---------------------------------------------------------------------------
# Wrapper
# ---------------------------------------------------------------------------
def _const_spec(a):
    n = a.ndim
    return pl.BlockSpec(a.shape, lambda i, _n=n: (0,) * _n)


def shellnet_forward(x, params, num_dim_token, *, tile=256):
    B, P, K, C = x.shape
    assert C == INPUT_CHANNEL
    assert K % NUM_DIVISION == 0
    # The three (1,2) convs reduce the pooled width 4 -> 3 -> 2 -> 1; the
    # torch.max over dim=2 is the identity only under this condition.
    assert NUM_DIVISION - 3 * (KERNEL_SIZE - 1) == 1

    N = B * P
    T = tile
    if N < T:
        T = max(8, ((N + 7) // 8) * 8)      # single block, sublane-aligned
    n_blocks = pl.cdiv(N, T)
    N_pad = n_blocks * T

    x2d = x.reshape(N * K, C)
    if N_pad != N:                           # remainder rows -> zero pad
        x2d = jnp.pad(x2d, ((0, (N_pad - N) * K), (0, 0)))

    w1, st1 = params["lift1"]
    w2, st2 = params["lift2"]
    wc1, stc1 = params["conv1"]
    wc2, stc2 = params["conv2"]
    wc3, stc3 = params["conv3"]
    we, be = params["embed"]
    tokpad = we.shape[1]
    assert tokpad % 128 == 0 and tokpad >= num_dim_token

    consts = (w1, st1, w2, st2, wc1, stc1, wc2, stc2, wc3, stc3, we, be)

    # Advisory cost estimate so XLA schedules around the custom call sensibly.
    flops_per_row = (
        K * 2 * (INPUT_CHANNEL * 64 + 64 * 128)
        + 3 * 2 * 256 * 128 + 2 * 2 * 256 * 256 + 2 * 512 * 512
        + 2 * 512 * tokpad)
    w_bytes = sum(int(a.size) * a.dtype.itemsize for a in consts)
    cost = pl.CostEstimate(
        flops=int(N_pad) * int(flops_per_row),
        transcendentals=0,
        bytes_accessed=int(x2d.size) * 4 + int(N_pad) * tokpad * 4
                       + int(n_blocks) * w_bytes)

    out = pl.pallas_call(
        _make_kernel(T, K),
        out_shape=jax.ShapeDtypeStruct((N_pad, tokpad), jnp.float32),
        grid=(n_blocks,),
        in_specs=[pl.BlockSpec((T * K, C), lambda i: (i, 0))]
                 + [_const_spec(a) for a in consts],
        out_specs=pl.BlockSpec((T, tokpad), lambda i: (i, 0)),
        compiler_params=pltpu.CompilerParams(
            dimension_semantics=("parallel",),
            # T=256 tile uses ~10-12 MiB incl. double buffers; 32 MiB is safe
            # on v5e/v6e (128 MiB VMEM) and v7x (64 MiB VMEM).
            vmem_limit_bytes=32 * 1024 * 1024),
        cost_estimate=cost,
    )(x2d, *consts)

    return out[:N, :num_dim_token].reshape(B, P, num_dim_token)


# ---------------------------------------------------------------------------
# Pure-JAX reference (same packed params, same bf16 matmul policy)
# ---------------------------------------------------------------------------
def shellnet_reference(x, params, num_dim_token):
    B, P, K, C = x.shape
    N = B * P
    w1, st1 = params["lift1"]
    w2, st2 = params["lift2"]
    wc1, stc1 = params["conv1"]
    wc2, stc2 = params["conv2"]
    wc3, stc3 = params["conv3"]
    we, be = params["embed"]

    h = x.reshape(N * K, C).astype(jnp.bfloat16)
    h = jnp.dot(h, w1, preferred_element_type=jnp.float32)
    h = jnp.maximum(h * st1[0:1] + st1[1:2], 0.0)
    h = jnp.dot(h.astype(jnp.bfloat16), w2, preferred_element_type=jnp.float32)
    h = jnp.maximum(h * st2[0:1] + st2[1:2], 0.0)
    h = h.reshape(N, K, 128)
    npd = K // NUM_DIVISION
    p = [jnp.max(h[:, j * npd:(j + 1) * npd, :], axis=1)
         for j in range(NUM_DIVISION)]

    def conv(xs, w, st):
        out = []
        for j in range(len(xs) - 1):
            z = jnp.dot(
                jnp.concatenate([xs[j], xs[j + 1]], axis=1).astype(jnp.bfloat16),
                w, preferred_element_type=jnp.float32)
            out.append(jnp.maximum(z * st[0:1] + st[1:2], 0.0))
        return out

    c3 = conv(conv(conv(p, wc1, stc1), wc2, stc2), wc3, stc3)[0]
    out = jnp.dot(c3.astype(jnp.bfloat16), we,
                  preferred_element_type=jnp.float32) + be
    return out[:, :num_dim_token].reshape(B, P, num_dim_token)


# ---------------------------------------------------------------------------
# Deterministic parameter construction (synthetic, already packed for the kernel)
# ---------------------------------------------------------------------------
def init_params(key, num_dim_token):
    keys = iter(jax.random.split(key, 64))
    tokpad = ((num_dim_token + 127) // 128) * 128

    def uniform(shape, bound):
        return jax.random.uniform(next(keys), shape, jnp.float32, -bound, bound)

    def bn_fold(bias, c):
        # eval-mode BN folded into scale/shift: y = z*s + t
        gamma = 1.0 + 0.1 * jax.random.normal(next(keys), (c,), jnp.float32)
        beta = 0.1 * jax.random.normal(next(keys), (c,), jnp.float32)
        mean = 0.1 * jax.random.normal(next(keys), (c,), jnp.float32)
        var = 1.0 + 0.1 * jnp.abs(jax.random.normal(next(keys), (c,), jnp.float32))
        s = gamma / jnp.sqrt(var + BN_EPS)
        t = beta + (bias - mean) * s
        return jnp.stack([s, t], axis=0)                     # (2, c) f32

    def linear_bn(cin, cout):
        bound = 1.0 / float(cin) ** 0.5
        w = uniform((cin, cout), bound)
        b = uniform((cout,), bound)
        return w.astype(jnp.bfloat16), bn_fold(b, cout)

    def conv_bn(cin, cout):
        bound = 1.0 / float(cin * KERNEL_SIZE) ** 0.5
        wa = uniform((cin, cout), bound)                     # kernel tap 0
        wb = uniform((cin, cout), bound)                     # kernel tap 1
        b = uniform((cout,), bound)
        w = jnp.concatenate([wa, wb], axis=0)                # taps stacked on K
        return w.astype(jnp.bfloat16), bn_fold(b, cout)

    params = {
        "lift1": linear_bn(INPUT_CHANNEL, 64),
        "lift2": linear_bn(64, 128),
        "conv1": conv_bn(128, 128),
        "conv2": conv_bn(128, 256),
        "conv3": conv_bn(256, 512),
    }
    bound = 1.0 / float(512) ** 0.5
    we = uniform((512, num_dim_token), bound)
    be = uniform((num_dim_token,), bound)
    we_pad = jnp.zeros((512, tokpad), jnp.float32).at[:, :num_dim_token].set(we)
    be_pad = jnp.zeros((1, tokpad), jnp.float32).at[:, :num_dim_token].set(be)
    params["embed"] = (we_pad.astype(jnp.bfloat16), be_pad)
    return params


# ---------------------------------------------------------------------------
if __name__ == "__main__":
    B, P, K = 2, 8, 8            # K divisible by num_division=4
    NUM_DIM_TOKEN = 32

    key = jax.random.PRNGKey(0)
    kx, kp = jax.random.split(key)
    x = jax.random.normal(kx, (B, P, K, INPUT_CHANNEL), jnp.float32)
    params = init_params(kp, NUM_DIM_TOKEN)

    out = shellnet_forward(x, params, NUM_DIM_TOKEN)
    out = jax.block_until_ready(out)
    assert out.shape == (B, P, NUM_DIM_TOKEN), out.shape
    assert bool(jnp.all(jnp.isfinite(out)))

    ref = shellnet_reference(x, params, NUM_DIM_TOKEN)
    assert bool(jnp.allclose(out, ref, rtol=2e-2, atol=2e-2)), float(
        jnp.max(jnp.abs(out - ref)))
    print("KERNEL_OK")
</pallas_src>

<mosaic_0001>
module attributes {stable_mosaic.version = 11 : i64} {
  func.func @kernel(%arg0: i32, %arg1: memref<128x6xf32, #tpu.memory_space<vmem>>, %arg2: memref<6x64xbf16, #tpu.memory_space<vmem>>, %arg3: memref<2x64xf32, #tpu.memory_space<vmem>>, %arg4: memref<64x128xbf16, #tpu.memory_space<vmem>>, %arg5: memref<2x128xf32, #tpu.memory_space<vmem>>, %arg6: memref<256x128xbf16, #tpu.memory_space<vmem>>, %arg7: memref<2x128xf32, #tpu.memory_space<vmem>>, %arg8: memref<256x256xbf16, #tpu.memory_space<vmem>>, %arg9: memref<2x256xf32, #tpu.memory_space<vmem>>, %arg10: memref<512x512xbf16, #tpu.memory_space<vmem>>, %arg11: memref<2x512xf32, #tpu.memory_space<vmem>>, %arg12: memref<512x128xbf16, #tpu.memory_space<vmem>>, %arg13: memref<1x128xf32, #tpu.memory_space<vmem>>, %arg14: memref<16x128xf32, #tpu.memory_space<vmem>>) attributes {dimension_semantics = [#tpu.dimension_semantics<parallel>], iteration_bounds = array<i64: 1>, scalar_prefetch = 0 : i64, scratch_operands = 0 : i64, tpu.core_type = #tpu.core_type<tc>, window_params = [{transform_indices = @transform_0, window_bounds = array<i64: 128, 6>}, {pipeline_mode = #tpu.pipeline_mode<synchronous>, transform_indices = @transform_1, window_bounds = array<i64: 6, 64>}, {pipeline_mode = #tpu.pipeline_mode<synchronous>, transform_indices = @transform_2, window_bounds = array<i64: 2, 64>}, {pipeline_mode = #tpu.pipeline_mode<synchronous>, transform_indices = @transform_3, window_bounds = array<i64: 64, 128>}, {pipeline_mode = #tpu.pipeline_mode<synchronous>, transform_indices = @transform_4, window_bounds = array<i64: 2, 128>}, {pipeline_mode = #tpu.pipeline_mode<synchronous>, transform_indices = @transform_5, window_bounds = array<i64: 256, 128>}, {pipeline_mode = #tpu.pipeline_mode<synchronous>, transform_indices = @transform_6, window_bounds = array<i64: 2, 128>}, {pipeline_mode = #tpu.pipeline_mode<synchronous>, transform_indices = @transform_7, window_bounds = array<i64: 256, 256>}, {pipeline_mode = #tpu.pipeline_mode<synchronous>, transform_indices = @transform_8, window_bounds = array<i64: 2, 256>}, {pipeline_mode = #tpu.pipeline_mode<synchronous>, transform_indices = @transform_9, window_bounds = array<i64: 512, 512>}, {pipeline_mode = #tpu.pipeline_mode<synchronous>, transform_indices = @transform_10, window_bounds = array<i64: 2, 512>}, {pipeline_mode = #tpu.pipeline_mode<synchronous>, transform_indices = @transform_11, window_bounds = array<i64: 512, 128>}, {pipeline_mode = #tpu.pipeline_mode<synchronous>, transform_indices = @transform_12, window_bounds = array<i64: 1, 128>}, {transform_indices = @transform_13, window_bounds = array<i64: 16, 128>}]} {
    %c0 = arith.constant 0 : index
    %c0_0 = arith.constant 0 : index
    %0 = vector.load %arg1[%c0, %c0_0] : memref<128x6xf32, #tpu.memory_space<vmem>>, vector<128x6xf32>
    %1 = arith.truncf %0 : vector<128x6xf32> to vector<128x6xbf16>
    %c0_1 = arith.constant 0 : index
    %c0_2 = arith.constant 0 : index
    %2 = vector.load %arg3[%c0_1, %c0_2] : memref<2x64xf32, #tpu.memory_space<vmem>>, vector<2x64xf32>
    %c0_3 = arith.constant 0 : index
    %c0_4 = arith.constant 0 : index
    %3 = vector.load %arg2[%c0_3, %c0_4] : memref<6x64xbf16, #tpu.memory_space<vmem>>, vector<6x64xbf16>
    %cst = arith.constant dense<0.000000e+00> : vector<128x64xf32>
    %4 = tpu.matmul %1, %3, %cst {dimension_numbers = #tpu.dot_dimension_numbers<[1], [0], [0], [1], [0, 0, 1, 1], [], []>} : vector<128x6xbf16>, vector<6x64xbf16>, vector<128x64xf32> -> vector<128x64xf32>
    %5 = vector.extract_strided_slice %2 {offsets = [0, 0], sizes = [1, 64], strides = [1, 1]} : vector<2x64xf32> to vector<1x64xf32>
    %6 = vector.broadcast %5 : vector<1x64xf32> to vector<128x64xf32>
    %7 = arith.mulf %4, %6 : vector<128x64xf32>
    %8 = vector.extract_strided_slice %2 {offsets = [1, 0], sizes = [1, 64], strides = [1, 1]} : vector<2x64xf32> to vector<1x64xf32>
    %9 = vector.broadcast %8 : vector<1x64xf32> to vector<128x64xf32>
    %10 = arith.addf %7, %9 : vector<128x64xf32>
    %cst_5 = arith.constant 0.000000e+00 : f32
    %11 = vector.broadcast %cst_5 : f32 to vector<128x64xf32>
    %12 = arith.maximumf %10, %11 : vector<128x64xf32>
    %c0_6 = arith.constant 0 : index
    %c0_7 = arith.constant 0 : index
    %13 = vector.load %arg5[%c0_6, %c0_7] : memref<2x128xf32, #tpu.memory_space<vmem>>, vector<2x128xf32>
    %14 = arith.truncf %12 : vector<128x64xf32> to vector<128x64xbf16>
    %c0_8 = arith.constant 0 : index
    %c0_9 = arith.constant 0 : index
    %15 = vector.load %arg4[%c0_8, %c0_9] : memref<64x128xbf16, #tpu.memory_space<vmem>>, vector<64x128xbf16>
    %cst_10 = arith.constant dense<0.000000e+00> : vector<128x128xf32>
    %16 = tpu.matmul %14, %15, %cst_10 {dimension_numbers = #tpu.dot_dimension_numbers<[1], [0], [0], [1], [0, 0, 1, 1], [], []>} : vector<128x64xbf16>, vector<64x128xbf16>, vector<128x128xf32> -> vector<128x128xf32>
    %17 = vector.extract_strided_slice %13 {offsets = [0, 0], sizes = [1, 128], strides = [1, 1]} : vector<2x128xf32> to vector<1x128xf32>
    %18 = vector.broadcast %17 : vector<1x128xf32> to vector<128x128xf32>
    %19 = arith.mulf %16, %18 : vector<128x128xf32>
    %20 = vector.extract_strided_slice %13 {offsets = [1, 0], sizes = [1, 128], strides = [1, 1]} : vector<2x128xf32> to vector<1x128xf32>
    %21 = vector.broadcast %20 : vector<1x128xf32> to vector<128x128xf32>
    %22 = arith.addf %19, %21 : vector<128x128xf32>
    %cst_11 = arith.constant 0.000000e+00 : f32
    %23 = vector.broadcast %cst_11 : f32 to vector<128x128xf32>
    %24 = arith.maximumf %22, %23 : vector<128x128xf32>
    %25 = vector.shape_cast %24 : vector<128x128xf32> to vector<16x8x128xf32>
    %26 = vector.extract_strided_slice %25 {offsets = [0, 0, 0], sizes = [16, 2, 128], strides = [1, 1, 1]} : vector<16x8x128xf32> to vector<16x2x128xf32>
    %cst_12 = arith.constant dense<0xFF800000> : vector<16x128xf32>
    %27 = vector.multi_reduction <maximumf>, %26, %cst_12 [1] : vector<16x2x128xf32> to vector<16x128xf32>
    %28 = vector.extract_strided_slice %25 {offsets = [0, 2, 0], sizes = [16, 2, 128], strides = [1, 1, 1]} : vector<16x8x128xf32> to vector<16x2x128xf32>
    %cst_13 = arith.constant dense<0xFF800000> : vector<16x128xf32>
    %29 = vector.multi_reduction <maximumf>, %28, %cst_13 [1] : vector<16x2x128xf32> to vector<16x128xf32>
    %30 = vector.extract_strided_slice %25 {offsets = [0, 4, 0], sizes = [16, 2, 128], strides = [1, 1, 1]} : vector<16x8x128xf32> to vector<16x2x128xf32>
    %cst_14 = arith.constant dense<0xFF800000> : vector<16x128xf32>
    %31 = vector.multi_reduction <maximumf>, %30, %cst_14 [1] : vector<16x2x128xf32> to vector<16x128xf32>
    %32 = vector.extract_strided_slice %25 {offsets = [0, 6, 0], sizes = [16, 2, 128], strides = [1, 1, 1]} : vector<16x8x128xf32> to vector<16x2x128xf32>
    %cst_15 = arith.constant dense<0xFF800000> : vector<16x128xf32>
    %33 = vector.multi_reduction <maximumf>, %32, %cst_15 [1] : vector<16x2x128xf32> to vector<16x128xf32>
    %34 = tpu.concatenate %27, %29 in 1 : vector<16x128xf32>, vector<16x128xf32> -> vector<16x256xf32>
    %35 = tpu.concatenate %29, %31 in 1 : vector<16x128xf32>, vector<16x128xf32> -> vector<16x256xf32>
    %36 = tpu.concatenate %31, %33 in 1 : vector<16x128xf32>, vector<16x128xf32> -> vector<16x256xf32>
    %37 = tpu.concatenate %34, %35, %36 in 0 : vector<16x256xf32>, vector<16x256xf32>, vector<16x256xf32> -> vector<48x256xf32>
    %38 = arith.truncf %37 : vector<48x256xf32> to vector<48x256xbf16>
    %c0_16 = arith.constant 0 : index
    %c0_17 = arith.constant 0 : index
    %39 = vector.load %arg7[%c0_16, %c0_17] : memref<2x128xf32, #tpu.memory_space<vmem>>, vector<2x128xf32>
    %c0_18 = arith.constant 0 : index
    %c0_19 = arith.constant 0 : index
    %40 = vector.load %arg6[%c0_18, %c0_19] : memref<256x128xbf16, #tpu.memory_space<vmem>>, vector<256x128xbf16>
    %cst_20 = arith.constant dense<0.000000e+00> : vector<48x128xf32>
    %41 = tpu.matmul %38, %40, %cst_20 {dimension_numbers = #tpu.dot_dimension_numbers<[1], [0], [0], [1], [0, 0, 1, 1], [], []>} : vector<48x256xbf16>, vector<256x128xbf16>, vector<48x128xf32> -> vector<48x128xf32>
    %42 = vector.extract_strided_slice %39 {offsets = [0, 0], sizes = [1, 128], strides = [1, 1]} : vector<2x128xf32> to vector<1x128xf32>
    %43 = vector.broadcast %42 : vector<1x128xf32> to vector<48x128xf32>
    %44 = arith.mulf %41, %43 : vector<48x128xf32>
    %45 = vector.extract_strided_slice %39 {offsets = [1, 0], sizes = [1, 128], strides = [1, 1]} : vector<2x128xf32> to vector<1x128xf32>
    %46 = vector.broadcast %45 : vector<1x128xf32> to vector<48x128xf32>
    %47 = arith.addf %44, %46 : vector<48x128xf32>
    %cst_21 = arith.constant 0.000000e+00 : f32
    %48 = vector.broadcast %cst_21 : f32 to vector<48x128xf32>
    %49 = arith.maximumf %47, %48 : vector<48x128xf32>
    %50 = vector.extract_strided_slice %49 {offsets = [0, 0], sizes = [16, 128], strides = [1, 1]} : vector<48x128xf32> to vector<16x128xf32>
    %51 = vector.extract_strided_slice %49 {offsets = [16, 0], sizes = [16, 128], strides = [1, 1]} : vector<48x128xf32> to vector<16x128xf32>
    %52 = tpu.concatenate %50, %51 in 1 : vector<16x128xf32>, vector<16x128xf32> -> vector<16x256xf32>
    %53 = vector.extract_strided_slice %49 {offsets = [16, 0], sizes = [16, 128], strides = [1, 1]} : vector<48x128xf32> to vector<16x128xf32>
    %54 = vector.extract_strided_slice %49 {offsets = [32, 0], sizes = [16, 128], strides = [1, 1]} : vector<48x128xf32> to vector<16x128xf32>
    %55 = tpu.concatenate %53, %54 in 1 : vector<16x128xf32>, vector<16x128xf32> -> vector<16x256xf32>
    %56 = tpu.concatenate %52, %55 in 0 : vector<16x256xf32>, vector<16x256xf32> -> vector<32x256xf32>
    %57 = arith.truncf %56 : vector<32x256xf32> to vector<32x256xbf16>
    %c0_22 = arith.constant 0 : index
    %c0_23 = arith.constant 0 : index
    %58 = vector.load %arg9[%c0_22, %c0_23] : memref<2x256xf32, #tpu.memory_space<vmem>>, vector<2x256xf32>
    %c0_24 = arith.constant 0 : index
    %c0_25 = arith.constant 0 : index
    %59 = vector.load %arg8[%c0_24, %c0_25] : memref<256x256xbf16, #tpu.memory_space<vmem>>, vector<256x256xbf16>
    %cst_26 = arith.constant dense<0.000000e+00> : vector<32x256xf32>
    %60 = tpu.matmul %57, %59, %cst_26 {dimension_numbers = #tpu.dot_dimension_numbers<[1], [0], [0], [1], [0, 0, 1, 1], [], []>} : vector<32x256xbf16>, vector<256x256xbf16>, vector<32x256xf32> -> vector<32x256xf32>
    %61 = vector.extract_strided_slice %58 {offsets = [0, 0], sizes = [1, 256], strides = [1, 1]} : vector<2x256xf32> to vector<1x256xf32>
    %62 = vector.broadcast %61 : vector<1x256xf32> to vector<32x256xf32>
    %63 = arith.mulf %60, %62 : vector<32x256xf32>
    %64 = vector.extract_strided_slice %58 {offsets = [1, 0], sizes = [1, 256], strides = [1, 1]} : vector<2x256xf32> to vector<1x256xf32>
    %65 = vector.broadcast %64 : vector<1x256xf32> to vector<32x256xf32>
    %66 = arith.addf %63, %65 : vector<32x256xf32>
    %cst_27 = arith.constant 0.000000e+00 : f32
    %67 = vector.broadcast %cst_27 : f32 to vector<32x256xf32>
    %68 = arith.maximumf %66, %67 : vector<32x256xf32>
    %69 = vector.extract_strided_slice %68 {offsets = [0, 0], sizes = [16, 256], strides = [1, 1]} : vector<32x256xf32> to vector<16x256xf32>
    %70 = vector.extract_strided_slice %68 {offsets = [16, 0], sizes = [16, 256], strides = [1, 1]} : vector<32x256xf32> to vector<16x256xf32>
    %71 = tpu.concatenate %69, %70 in 1 : vector<16x256xf32>, vector<16x256xf32> -> vector<16x512xf32>
    %72 = arith.truncf %71 : vector<16x512xf32> to vector<16x512xbf16>
    %c0_28 = arith.constant 0 : index
    %c0_29 = arith.constant 0 : index
    %73 = vector.load %arg11[%c0_28, %c0_29] : memref<2x512xf32, #tpu.memory_space<vmem>>, vector<2x512xf32>
    %c0_30 = arith.constant 0 : index
    %c0_31 = arith.constant 0 : index
    %74 = vector.load %arg10[%c0_30, %c0_31] : memref<512x512xbf16, #tpu.memory_space<vmem>>, vector<512x512xbf16>
    %cst_32 = arith.constant dense<0.000000e+00> : vector<16x512xf32>
    %75 = tpu.matmul %72, %74, %cst_32 {dimension_numbers = #tpu.dot_dimension_numbers<[1], [0], [0], [1], [0, 0, 1, 1], [], []>} : vector<16x512xbf16>, vector<512x512xbf16>, vector<16x512xf32> -> vector<16x512xf32>
    %76 = vector.extract_strided_slice %73 {offsets = [0, 0], sizes = [1, 512], strides = [1, 1]} : vector<2x512xf32> to vector<1x512xf32>
    %77 = vector.broadcast %76 : vector<1x512xf32> to vector<16x512xf32>
    %78 = arith.mulf %75, %77 : vector<16x512xf32>
    %79 = vector.extract_strided_slice %73 {offsets = [1, 0], sizes = [1, 512], strides = [1, 1]} : vector<2x512xf32> to vector<1x512xf32>
    %80 = vector.broadcast %79 : vector<1x512xf32> to vector<16x512xf32>
    %81 = arith.addf %78, %80 : vector<16x512xf32>
    %cst_33 = arith.constant 0.000000e+00 : f32
    %82 = vector.broadcast %cst_33 : f32 to vector<16x512xf32>
    %83 = arith.maximumf %81, %82 : vector<16x512xf32>
    %84 = arith.truncf %83 : vector<16x512xf32> to vector<16x512xbf16>
    %c0_34 = arith.constant 0 : index
    %c0_35 = arith.constant 0 : index
    %85 = vector.load %arg12[%c0_34, %c0_35] : memref<512x128xbf16, #tpu.memory_space<vmem>>, vector<512x128xbf16>
    %cst_36 = arith.constant dense<0.000000e+00> : vector<16x128xf32>
    %86 = tpu.matmul %84, %85, %cst_36 {dimension_numbers = #tpu.dot_dimension_numbers<[1], [0], [0], [1], [0, 0, 1, 1], [], []>} : vector<16x512xbf16>, vector<512x128xbf16>, vector<16x128xf32> -> vector<16x128xf32>
    %c0_37 = arith.constant 0 : index
    %c0_38 = arith.constant 0 : index
    %87 = vector.load %arg13[%c0_37, %c0_38] : memref<1x128xf32, #tpu.memory_space<vmem>>, vector<1x128xf32>
    %88 = vector.broadcast %87 : vector<1x128xf32> to vector<16x128xf32>
    %89 = arith.addf %86, %88 : vector<16x128xf32>
    %c0_39 = arith.constant 0 : index
    %c0_40 = arith.constant 0 : index
    %90 = vector.load %arg14[%c0_39, %c0_40] : memref<16x128xf32, #tpu.memory_space<vmem>>, vector<16x128xf32>
    tpu.vector_store %arg14[%c0_39, %c0_40], %89 {strides = array<i32>} : memref<16x128xf32, #tpu.memory_space<vmem>>, vector<16x128xf32>,
    return
  }
  func.func @transform_0(%arg0: i32) -> (i32, i32) {
    %c0_i32 = arith.constant 0 : i32
    %c0_i32_0 = arith.constant 0 : i32
    return %arg0, %c0_i32 : i32, i32
  }
  func.func @transform_1(%arg0: i32) -> (i32, i32) {
    %c0_i32 = arith.constant 0 : i32
    %c0_i32_0 = arith.constant 0 : i32
    %c0_i32_1 = arith.constant 0 : i32
    return %c0_i32, %c0_i32_0 : i32, i32
  }
  func.func @transform_2(%arg0: i32) -> (i32, i32) {
    %c0_i32 = arith.constant 0 : i32
    %c0_i32_0 = arith.constant 0 : i32
    %c0_i32_1 = arith.constant 0 : i32
    return %c0_i32, %c0_i32_0 : i32, i32
  }
  func.func @transform_3(%arg0: i32) -> (i32, i32) {
    %c0_i32 = arith.constant 0 : i32
    %c0_i32_0 = arith.constant 0 : i32
    %c0_i32_1 = arith.constant 0 : i32
    return %c0_i32, %c0_i32_0 : i32, i32
  }
  func.func @transform_4(%arg0: i32) -> (i32, i32) {
    %c0_i32 = arith.constant 0 : i32
    %c0_i32_0 = arith.constant 0 : i32
    %c0_i32_1 = arith.constant 0 : i32
    return %c0_i32, %c0_i32_0 : i32, i32
  }
  func.func @transform_5(%arg0: i32) -> (i32, i32) {
    %c0_i32 = arith.constant 0 : i32
    %c0_i32_0 = arith.constant 0 : i32
    %c0_i32_1 = arith.constant 0 : i32
    return %c0_i32, %c0_i32_0 : i32, i32
  }
  func.func @transform_6(%arg0: i32) -> (i32, i32) {
    %c0_i32 = arith.constant 0 : i32
    %c0_i32_0 = arith.constant 0 : i32
    %c0_i32_1 = arith.constant 0 : i32
    return %c0_i32, %c0_i32_0 : i32, i32
  }
  func.func @transform_7(%arg0: i32) -> (i32, i32) {
    %c0_i32 = arith.constant 0 : i32
    %c0_i32_0 = arith.constant 0 : i32
    %c0_i32_1 = arith.constant 0 : i32
    return %c0_i32, %c0_i32_0 : i32, i32
  }
  func.func @transform_8(%arg0: i32) -> (i32, i32) {
    %c0_i32 = arith.constant 0 : i32
    %c0_i32_0 = arith.constant 0 : i32
    %c0_i32_1 = arith.constant 0 : i32
    return %c0_i32, %c0_i32_0 : i32, i32
  }
  func.func @transform_9(%arg0: i32) -> (i32, i32) {
    %c0_i32 = arith.constant 0 : i32
    %c0_i32_0 = arith.constant 0 : i32
    %c0_i32_1 = arith.constant 0 : i32
    return %c0_i32, %c0_i32_0 : i32, i32
  }
  func.func @transform_10(%arg0: i32) -> (i32, i32) {
    %c0_i32 = arith.constant 0 : i32
    %c0_i32_0 = arith.constant 0 : i32
    %c0_i32_1 = arith.constant 0 : i32
    return %c0_i32, %c0_i32_0 : i32, i32
  }
  func.func @transform_11(%arg0: i32) -> (i32, i32) {
    %c0_i32 = arith.constant 0 : i32
    %c0_i32_0 = arith.constant 0 : i32
    %c0_i32_1 = arith.constant 0 : i32
    return %c0_i32, %c0_i32_0 : i32, i32
  }
  func.func @transform_12(%arg0: i32) -> (i32, i32) {
    %c0_i32 = arith.constant 0 : i32
    %c0_i32_0 = arith.constant 0 : i32
    %c0_i32_1 = arith.constant 0 : i32
    return %c0_i32, %c0_i32_0 : i32, i32
  }
  func.func @transform_13(%arg0: i32) -> (i32, i32) {
    %c0_i32 = arith.constant 0 : i32
    %c0_i32_0 = arith.constant 0 : i32
    return %arg0, %c0_i32 : i32, i32
  }
}

</mosaic_0001>

<bundles_post_ra>
// kernel: tpu_custom_call.1
= control target key start
LH: loop header
LB: loop body
LE: loop exit
PB: predicated region body
PF: predicated region fallthrough
CT: control target
= control target key end

     0   :  { %18 = vsyncpa [#allocation3], 0  ;;  %s4603_s0 = inlined_call_operand.vmem [shape: f32[128,6], index: 0, kind: input, shape index: {}]   ;;  %s4604_s1 = inlined_call_operand.vmem [shape: bf16[6,64], index: 1, kind: input, shape index: {}]   ;;  %s4605_s2 = inlined_call_operand.hbm [shape: f32[2,64], index: 2, kind: input, shape index: {}]   ;;  %s4606_s3 = inlined_call_operand.hbm [shape: bf16[64,128], index: 3, kind: input, shape index: {}]   ;;  %s4607_s4 = inlined_call_operand.hbm [shape: f32[2,128], index: 4, kind: input, shape index: {}]   ;;  %s4608_s5 = inlined_call_operand.vmem [shape: bf16[256,128], index: 5, kind: input, shape index: {}]   ;;  %s4609_s6 = inlined_call_operand.vmem [shape: f32[2,128], index: 6, kind: input, shape index: {}]   ;;  %s4610_s7 = inlined_call_operand.hbm [shape: bf16[256,256], index: 7, kind: input, shape index: {}]   ;;  %s4611_s8 = inlined_call_operand.vmem [shape: f32[2,256], index: 8, kind: input, shape index: {}]   ;;  %s4612_s9 = inlined_call_operand.hbm [shape: bf16[512,512], index: 9, kind: input, shape index: {}]   ;;  %s4613_s10 = inlined_call_operand.vmem [shape: f32[2,512], index: 10, kind: input, shape index: {}]   ;;  %s4614_s11 = inlined_call_operand.hbm [shape: bf16[512,128], index: 11, kind: input, shape index: {}]   ;;  %s4615_s12 = inlined_call_operand.vmem [shape: f32[1,128], index: 12, kind: input, shape index: {}]   ;;  %s4616_s13 = inlined_call_operand.hbm [shape: f32[16,128], index: 13, kind: output, shape index: {}]  }
   0x1   :  { %19 = vsyncpa [#allocation6], 0 }
   0x2   :  { %20 = vsyncpa [#allocation9], 0 }
   0x3   :  { %21 = vsyncpa [#allocation12], 0 }
   0x4   :  { %22 = vsyncpa [#allocation4], 0  ;;  %s3903_s25 = smov [#allocation5]  }
   0x5   :  { %s42_s26 = sshll.u32 %s3903_s25, 4  ;;  %s43_s26 = int_to_ptr.vmem [resolvable:$true] %s42_s26 }
   0x6   :  { %s3761_s27 = scalar_lea.vmem %s43_s26, 512  ;;  %p3766_p1 = scmp.lt.s32.totalorder %s43_s26, %s43_s26 }
   0x7   :  { %p3762_p0 = scmp.ne.s32.totalorder %s43_s26, %s3761_s27  ;;  %p3767_p2 = scmp.lt.s32.totalorder %s3761_s27, %s3761_s27 }
   0x9   :  { %p3768_p3 = por %p3767_p2, %p3766_p1 }
   0xb   :  { %p3769_p4 = pnand %p3768_p3, %p3762_p0 }
   0xd   :  { %3772 = shalt.err (!%p3769_p4)
}
   0xe   :  { %s3904_s28 = smov 64   ;;  %s3905_s29 = smov 4  }
   0xf   :  { %48 = dma.hbm_to_vmem [thread:$0]  %s4606_s3, 512, %s43_s26, [#allocation6], %s3904_s28, %s3904_s28, %s3905_s29  }
  0x10   :  { %s3906_s15 = smov [#allocation8]  }
  0x11   :  { %s68_s16 = sshll.u32 %s3906_s15, 4  ;;  %s69_s16 = int_to_ptr.vmem [resolvable:$true] %s68_s16 }
  0x12   :  { %s3781_s17 = scalar_lea.vmem %s69_s16, 4096  ;;  %p3786_p6 = scmp.lt.s32.totalorder %s69_s16, %s69_s16 }
  0x13   :  { %p3782_p5 = scmp.ne.s32.totalorder %s69_s16, %s3781_s17  ;;  %p3787_p7 = scmp.lt.s32.totalorder %s3781_s17, %s3781_s17 }
  0x15   :  { %p3788_p8 = por %p3787_p7, %p3786_p6 }
  0x17   :  { %p3789_p9 = pnand %p3788_p8, %p3782_p5 }
  0x19   :  { %3792 = shalt.err (!%p3789_p9)
}
  0x1a   :  { %s3907_s18 = smov 128   ;;  %s3908_s19 = smov 8  }
  0x1b   :  { %74 = dma.hbm_to_vmem [thread:$0]  %s4610_s7, 4096, %s69_s16, [#allocation9], %s3907_s18, %s3907_s18, %s3908_s19  }
  0x1c   :  { %s3909_s3 = smov [#allocation2]   ;;  %s3910_s23 = smov [#allocation7]  }
  0x1d   :  { %s33_s22 = sshll.u32 %s3909_s3, 4  ;;  %s55_s24 = sshll.u32 %s3910_s23, 4  ;;  %s34_s22 = int_to_ptr.vmem [resolvable:$true] %s33_s22  ;;  %s56_s24 = int_to_ptr.vmem [resolvable:$true] %s55_s24 }
  0x1e   :  { %s3801_s25 = scalar_lea.vmem %s34_s22, 32  ;;  %p3806_p11 = scmp.lt.s32.totalorder %s34_s22, %s34_s22 }
  0x1f   :  { %p3802_p10 = scmp.ne.s32.totalorder %s34_s22, %s3801_s25  ;;  %p3807_p12 = scmp.lt.s32.totalorder %s3801_s25, %s3801_s25 }
  0x21   :  { %p3808_p13 = por %p3807_p12, %p3806_p11 }
  0x23   :  { %p3809_p0 = pnand %p3808_p13, %p3802_p10 }
  0x25   :  { %3812 = shalt.err (!%p3809_p0)
}
  0x26   :  { %36 = dma.hbm_to_vmem [thread:$0]  %s4605_s2, 32, %s34_s22, [#allocation3]  }
  0x27   :  { %s3821_s30 = scalar_lea.vmem %s56_s24, 32  ;;  %p3826_p2 = scmp.lt.s32.totalorder %s56_s24, %s56_s24 }
  0x28   :  { %p3822_p1 = scmp.ne.s32.totalorder %s56_s24, %s3821_s30  ;;  %p3827_p3 = scmp.lt.s32.totalorder %s3821_s30, %s3821_s30 }
  0x2a   :  { %p3828_p4 = por %p3827_p3, %p3826_p2 }
  0x2c   :  { %p3829_p5 = pnand %p3828_p4, %p3822_p1 }
  0x2e   :  { %3832 = shalt.err (!%p3829_p5)
}
  0x2f   :  { %58 = dma.hbm_to_vmem [thread:$0]  %s4607_s4, 32, %s56_s24, [#allocation6]  }
  0x30   :  { %s3911_s15 = smov [#allocation10]  }
  0x31   :  { %s82_s16 = sshll.u32 %s3911_s15, 4  ;;  %s83_s16 = int_to_ptr.vmem [resolvable:$true] %s82_s16 }
  0x32   :  { %s3841_s17 = scalar_lea.vmem %s83_s16, 16384  ;;  %p3846_p7 = scmp.lt.s32.totalorder %s83_s16, %s83_s16 }
  0x33   :  { %p3842_p6 = scmp.ne.s32.totalorder %s83_s16, %s3841_s17  ;;  %p3847_p8 = scmp.lt.s32.totalorder %s3841_s17, %s3841_s17 }
  0x35   :  { %p3848_p9 = por %p3847_p8, %p3846_p7 }
  0x37   :  { %p3849_p10 = pnand %p3848_p9, %p3842_p6 }
  0x39   :  { %3852 = shalt.err (!%p3849_p10)
}
  0x3a   :  { %s3912_s2 = smov 256   ;;  %s3913_s20 = smov 16  }
  0x3b   :  { %88 = dma.hbm_to_vmem [thread:$0]  %s4612_s9, 16384, %s83_s16, [#allocation9], %s3912_s2, %s3912_s2, %s3913_s20  }
  0x3c   :  { %s3914_s22 = smov [#allocation11]  }
  0x3d   :  { %s96_s23 = sshll.u32 %s3914_s22, 4  ;;  %s97_s23 = int_to_ptr.vmem [resolvable:$true] %s96_s23 }
  0x3e   :  { %s3861_s4 = scalar_lea.vmem %s97_s23, 4096  ;;  %p3866_p12 = scmp.lt.s32.totalorder %s97_s23, %s97_s23 }
  0x3f   :  { %p3862_p11 = scmp.ne.s32.totalorder %s97_s23, %s3861_s4  ;;  %p3867_p13 = scmp.lt.s32.totalorder %s3861_s4, %s3861_s4 }
  0x41   :  { %p3868_p0 = por %p3867_p13, %p3866_p12 }
  0x43   :  { %p3869_p1 = pnand %p3868_p0, %p3862_p11 }
  0x45   :  { %3872 = shalt.err (!%p3869_p1)
}
  0x46   :  { %102 = dma.hbm_to_vmem [thread:$0]  %s4614_s11, 4096, %s97_s23, [#allocation12], %s3904_s28, %s3904_s28, %s3905_s29  }
  0x47   :  { %3893 = dma.done.wait [#allocation3], 32  }
  0x48   :  { %3894 = vsyncadd [#allocation3], 4294967264 }
  0x49   :  { %3895 = dma.done.wait [#allocation6], 544  }
  0x4a   :  { %3896 = vsyncadd [#allocation6], 4294966752 }
  0x4b   :  { %3897 = dma.done.wait [#allocation9], 20480  }
  0x4c   :  { %3898 = vsyncadd [#allocation9], 4294946816 }
  0x4d   :  { %3899 = dma.done.wait [#allocation12], 4096  }
  0x4e   :  { %3900 = vsyncadd [#allocation12], 4294963200  ;;  %vm175_vm0 = vcmask 1042432   ;;  %v149_v0 = vld [vmem:[%s4604_s1] sm:$0x7]  ;;  %v125_v2 = vld [vmem:[%s4603_s0 + $0x8] sm:$0xff]  ;;  %v276_v30 = vlaneseq }
  0x4f   :  { %v124_v1 = vld [vmem:[%s4603_s0] sm:$0xff]  ;;  %vm150_vm1 = vcmask 48128   ;;  %3447 = vmatprep.subr.msk.bf16.mxu0 %vm175_vm0, %v149_v0  ;;  %v177_v3 = vsel %vm175_vm0, %v149_v0, 0  ;;  %v126_v5 = vld [vmem:[%s4603_s0 + $0x10] sm:$0xff]  ;;  %v127_v6 = vld [vmem:[%s4603_s0 + $0x18] sm:$0xff]  ;;  %vm373_vm2 = vcmask 523264  }
  0x50   :  { %v140_v4 = vpack.c.bf16 %v125_v2, %v124_v1  ;;  %v128_v7 = vld [vmem:[%s4603_s0 + $0x20] sm:$0xff]  ;;  %3406 = vmatpush3.bf16.msra.mxu0 %v177_v3  ;;  %v141_v8 = vpack.c.bf16 %v127_v6, %v126_v5  ;;  %v129_v9 = vld [vmem:[%s4603_s0 + $0x28] sm:$0xff]  ;;  %v130_v11 = vld [vmem:[%s4603_s0 + $0x30] sm:$0xff]  ;;  %v4072_v31 = vshrl.u32 %v276_v30, 7  ;;  %vm551_vm3 = vcmask 1041408   ;;  %s3915_s27 = smov [#allocation13]  }
  0x51   :  { %v142_v10 = vpack.c.bf16 %v129_v9, %v128_v7  ;;  %v131_v12 = vld [vmem:[%s4603_s0 + $0x38] sm:$0xff]  ;;  %v132_v13 = vld [vmem:[%s4603_s0 + $0x40] sm:$0xff]  ;;  %v133_v14 = vld [vmem:[%s4603_s0 + $0x48] sm:$0xff]  ;;  %vm664_vm4 = vcmask 1043458   ;;  %vm777_vm5 = vcmask 1045508   ;;  %vm890_vm6 = vcmask 1047558  }
  0x52   :  { %3407 = vmatprep.mubr.msk.bf16.mxu0 %vm150_vm1, %v140_v4  ;;  %v143_v15 = vpack.c.bf16 %v131_v12, %v130_v11  ;;  %v144_v16 = vpack.c.bf16 %v133_v14, %v132_v13  ;;  %v134_v17 = vld [vmem:[%s4603_s0 + $0x50] sm:$0xff]  ;;  %v135_v18 = vld [vmem:[%s4603_s0 + $0x58] sm:$0xff]  ;;  %v136_v19 = vld [vmem:[%s4603_s0 + $0x60] sm:$0xff]  ;;  %4629 = vst [vmem:[#allocation19_spill] sm:$0xff] %v4072_v31  ;;  %v4075_v32 = vsub.s32 0, %v4072_v31  ;;  %v4081_v36 = vsub.s32 1, %v4072_v31 }
  0x53   :  { %3408 = vmatmul.mubr.msk.bf16.vlgmr.msra.gmra.mxu0 %vm150_vm1, %v141_v8  ;;  %v137_v20 = vld [vmem:[%s4603_s0 + $0x68] sm:$0xff]  ;;  %v145_v21 = vpack.c.bf16 %v135_v18, %v134_v17  ;;  %v138_v23 = vld [vmem:[%s4603_s0 + $0x70] sm:$0xff]  ;;  %v139_v24 = vld [vmem:[%s4603_s0 + $0x78] sm:$0xff]  ;;  %vm1019_vm7 = vcmask 1041409   ;;  %vm1021_vm8 = vcmask 1042434   ;;  %vm1023_vm9 = vcmask 1043459  }
  0x54   :  { %3411 = vmatprep.mubr.msk.bf16.mxu0 %vm150_vm1, %v142_v10  ;;  %v146_v22 = vpack.c.bf16 %v137_v20, %v136_v19  ;;  %v147_v25 = vpack.c.bf16 %v139_v24, %v138_v23  ;;  %v3461_v26 = vld [vmem:[#allocation5 + $0x18] sm:$0xff]   ;;  %v3462_v27 = vld [vmem:[#allocation5 + $0x10] sm:$0xff]   ;;  %v3463_v28 = vld [vmem:[#allocation5 + $0x8] sm:$0xff]   ;;  %4630 = vst [vmem:[#allocation20_spill] sm:$0xff] %v4075_v32  ;;  %vm1025_vm10 = vcmask 1044484   ;;  %vm1027_vm11 = vcmask 1045509  }
  0x55   :  { %3423 = vmatprep.subr.bf16.mxu1 %v3461_v26  ;;  %v3464_v29 = vld [vmem:[#allocation5] sm:$0xff]   ;;  %v148_v33 = vld [vmem:[#allocation2] sm:$0x3]  ;;  %4631 = vst [vmem:[#allocation21_spill] sm:$0xff] %v4081_v36  ;;  %vm1029_vm12 = vcmask 1046534   ;;  %vm1031_vm13 = vcmask 1047559  }
  0x56   :  { %3424 = vmatpush3.bf16.msra.mxu1 %v3461_v26  ;;  %v4078_v35 = vrot.slane %v148_v33, %v4075_v32  ;;  %v4086_v40 = vrot.slane %v148_v33, %v4081_v36  ;;  %s3062_s30 = sshll.u32 %s3915_s27, 4  ;;  %s3063_s30 = int_to_ptr.vmem [resolvable:$true] %s3062_s30 }
  0x57   :  { %3425 = vmatprep.subr.bf16.mxu1 %v3462_v27  ;;  %s3873_s7 = scalar_lea.vmem %s3063_s30, 256  ;;  %p3878_p3 = scmp.lt.s32.totalorder %s3063_s30, %s3063_s30 }
  0x58   :  { %p3874_p2 = scmp.ne.s32.totalorder %s3063_s30, %s3873_s7  ;;  %p3879_p4 = scmp.lt.s32.totalorder %s3873_s7, %s3873_s7 }
  0x5a   :  { %3426 = vmatpush3.bf16.msra.mxu1 %v3462_v27  ;;  %p3880_p5 = por %p3879_p4, %p3878_p3 }
  0x5b   :  { %3412 = vmatmul.mubr.msk.bf16.gmra.mxu0 %vm150_vm1, %v143_v15  ;;  %3427 = vmatprep.subr.bf16.mxu1 %v3463_v28 }
  0x5c   :  { %3415 = vmatprep.mubr.msk.bf16.mxu0 %vm150_vm1, %v144_v16  ;;  %p3881_p6 = pnand %p3880_p5, %p3874_p2 }
  0x5e   :  { %3428 = vmatpush3.bf16.msra.mxu1 %v3463_v28 }
  0x5f   :  { %3429 = vmatprep.subr.bf16.mxu1 %v3464_v29 }
  0x62   :  { %3430 = vmatpush3.bf16.msra.mxu1 %v3464_v29 }
  0x63   :  { %3416 = vmatmul.mubr.msk.bf16.gmra.mxu0 %vm150_vm1, %v145_v21 }
  0x64   :  { %3419 = vmatprep.mubr.msk.bf16.mxu0 %vm150_vm1, %v146_v22 }
  0x6b   :  { %3420 = vmatmul.mubr.msk.bf16.gmra.mxu0 %vm150_vm1, %v147_v25 }
 0x113   :  { %v3409_v34 = vpop.f32.mrf.mxu0 }
 0x114   :  { %v282_v39 = vmul.f32 %v3409_v34, %v4078_v35 }
 0x115   :  { %v213_v37 = vpop.f32.mrf.mxu0 }
 0x116   :  { %v280_v38 = vmul.f32 %v4078_v35, %v213_v37  ;;  %v302_v47 = vadd.f32 %v4086_v40, %v282_v39 }
 0x117   :  { %v3410_v41 = vpop.f32.mrf.mxu0 }
 0x118   :  { %v283_v42 = vmul.f32 %v3410_v41, %v4078_v35  ;;  %v300_v44 = vadd.f32 %v4086_v40, %v280_v38  ;;  %v318_v55 = vmax.f32 %v302_v47, 0.0 }
 0x119   :  { %v216_v43 = vpop.f32.mrf.mxu0 }
 0x11a   :  { %v303_v45 = vadd.f32 %v4086_v40, %v283_v42  ;;  %v281_v46 = vmul.f32 %v4078_v35, %v216_v43  ;;  %v316_v52 = vmax.f32 %v300_v44, 0.0 }
 0x11b   :  { %v3413_v48 = vpop.f32.mrf.mxu0 }
 0x11c   :  { %v301_v49 = vadd.f32 %v4086_v40, %v281_v46  ;;  %v319_v50 = vmax.f32 %v303_v45, 0.0  ;;  %v286_v56 = vmul.f32 %v3413_v48, %v4078_v35 }
 0x11d   :  { %v229_v51 = vpop.f32.mrf.mxu0 }
 0x11e   :  { %v317_v53 = vmax.f32 %v301_v49, 0.0  ;;  %v284_v54 = vmul.f32 %v4078_v35, %v229_v51  ;;  %v334_v60 = vpack.c.bf16 %v319_v50, %v318_v55  ;;  %v306_v1 = vadd.f32 %v4086_v40, %v286_v56  ;;  %v3466_v50 = vld [vmem:[%s4608_s5 + $0x38] sm:$0xff]   ;;  %v3468_v51 = vld [vmem:[%s4608_s5 + $0x30] sm:$0xff]   ;;  %v3472_v55 = vld [vmem:[%s4608_s5 + $0x20] sm:$0xff]  }
 0x11f   :  { %v3414_v57 = vpop.f32.mrf.mxu0  ;;  %v3473_v56 = vld [vmem:[%s4608_s5 + $0x58] sm:$0xff]  }
 0x120   :  { %v287_v58 = vmul.f32 %v3414_v57, %v4078_v35  ;;  %v333_v59 = vpack.c.bf16 %v317_v53, %v316_v52  ;;  %v304_v62 = vadd.f32 %v4086_v40, %v284_v54  ;;  %v322_v9 = vmax.f32 %v306_v1, 0.0  ;;  %v3469_v52 = vld [vmem:[%s4608_s5 + $0x68] sm:$0xff]   ;;  %v3471_v54 = vld [vmem:[%s4608_s5 + $0x60] sm:$0xff]   ;;  %v3474_v57 = vld [vmem:[%s4608_s5 + $0x18] sm:$0xff]  }
 0x121   :  { %v232_v61 = vpop.f32.mrf.mxu0  ;;  %v3470_v53 = vld [vmem:[%s4608_s5 + $0x28] sm:$0xff]   ;;  %v3480_v1 = vld [vmem:[%s4608_s5] sm:$0xff]  }
 0x122   :  { %v307_v63 = vadd.f32 %v4086_v40, %v287_v58  ;;  %v285_v0 = vmul.f32 %v4078_v35, %v232_v61  ;;  %3431 = vmatprep.mubr.msk.bf16.mxu1 %vm373_vm2, %v333_v59  ;;  %v320_v6 = vmax.f32 %v304_v62, 0.0  ;;  %v3475_v58 = vld [vmem:[%s4608_s5 + $0x50] sm:$0xff]   ;;  %v3477_v61 = vld [vmem:[%s4608_s5 + $0x48] sm:$0xff]  }
 0x123   :  { %v3417_v2 = vpop.f32.mrf.mxu0  ;;  %3432 = vmatmul.mubr.msk.bf16.vlgmr.msra.gmra.mxu1 %vm373_vm2, %v334_v60  ;;  %v3476_v59 = vld [vmem:[%s4608_s5 + $0x10] sm:$0xff]   ;;  %v332_v60 = vld [vmem:[#allocation7] sm:$0x3]  ;;  %v3478_v62 = vld [vmem:[%s4608_s5 + $0x8] sm:$0xff]  }
 0x124   :  { %v305_v3 = vadd.f32 %v4086_v40, %v285_v0  ;;  %v323_v4 = vmax.f32 %v307_v63, 0.0  ;;  %v290_v10 = vmul.f32 %v3417_v2, %v4078_v35  ;;  %v3479_v63 = vld [vmem:[%s4608_s5 + $0x40] sm:$0xff]   ;;  %v4172_v0 = vrot.slane %v332_v60, %v4075_v32 }
 0x125   :  { %v245_v5 = vpop.f32.mrf.mxu0  ;;  %v4178_v2 = vrot.slane %v332_v60, %v4081_v36 }
 0x126   :  { %v321_v7 = vmax.f32 %v305_v3, 0.0  ;;  %v288_v8 = vmul.f32 %v4078_v35, %v245_v5  ;;  %v336_v14 = vpack.c.bf16 %v323_v4, %v322_v9  ;;  %v310_v19 = vadd.f32 %v4086_v40, %v290_v10 }
 0x127   :  { %v3418_v11 = vpop.f32.mrf.mxu0 }
 0x128   :  { %v335_v12 = vpack.c.bf16 %v321_v7, %v320_v6  ;;  %v291_v13 = vmul.f32 %v3418_v11, %v4078_v35  ;;  %v308_v16 = vadd.f32 %v4086_v40, %v288_v8  ;;  %v326_v27 = vmax.f32 %v310_v19, 0.0 }
 0x129   :  { %v248_v15 = vpop.f32.mrf.mxu0 }
 0x12a   :  { %v311_v17 = vadd.f32 %v4086_v40, %v291_v13  ;;  %v289_v18 = vmul.f32 %v4078_v35, %v248_v15  ;;  %3435 = vmatprep.mubr.msk.bf16.mxu1 %vm373_vm2, %v335_v12  ;;  %v324_v24 = vmax.f32 %v308_v16, 0.0 }
 0x12b   :  { %v3421_v20 = vpop.f32.mrf.mxu0  ;;  %3436 = vmatmul.mubr.msk.bf16.gmra.mxu1 %vm373_vm2, %v336_v14 }
 0x12c   :  { %v309_v21 = vadd.f32 %v4086_v40, %v289_v18  ;;  %v327_v22 = vmax.f32 %v311_v17, 0.0  ;;  %v294_v28 = vmul.f32 %v3421_v20, %v4078_v35 }
 0x12d   :  { %v261_v23 = vpop.f32.mrf.mxu0 }
 0x12e   :  { %v325_v25 = vmax.f32 %v309_v21, 0.0  ;;  %v292_v26 = vmul.f32 %v4078_v35, %v261_v23  ;;  %v338_v34 = vpack.c.bf16 %v327_v22, %v326_v27  ;;  %v314_v42 = vadd.f32 %v4086_v40, %v294_v28 }
 0x12f   :  { %v3422_v29 = vpop.f32.mrf.mxu0 }
 0x130   :  { %v337_v30 = vpack.c.bf16 %v325_v25, %v324_v24  ;;  %v295_v33 = vmul.f32 %v3422_v29, %v4078_v35  ;;  %v312_v38 = vadd.f32 %v4086_v40, %v292_v26  ;;  %v330_v47 = vmax.f32 %v314_v42, 0.0 }
 0x131   :  { %v264_v37 = vpop.f32.mrf.mxu0 }
 0x132   :  { %v315_v39 = vadd.f32 %v4086_v40, %v295_v33  ;;  %v293_v41 = vmul.f32 %v4078_v35, %v264_v37  ;;  %3439 = vmatprep.mubr.msk.bf16.mxu1 %vm373_vm2, %v337_v30  ;;  %v328_v45 = vmax.f32 %v312_v38, 0.0  ;;  %v3465_v35 = vld [vmem:[%s4608_s5 + $0x78] sm:$0xff]  }
 0x133   :  { %3440 = vmatmul.mubr.msk.bf16.gmra.mxu1 %vm373_vm2, %v338_v34  ;;  %3327 = vmatprep.subr.bf16.mxu0 %v3465_v35 }
 0x134   :  { %v313_v43 = vadd.f32 %v4086_v40, %v293_v41  ;;  %v331_v44 = vmax.f32 %v315_v39, 0.0  ;;  %3328 = vmatpush3.bf16.msra.mxu0 %v3466_v50  ;;  %v3467_v40 = vld [vmem:[%s4608_s5 + $0x70] sm:$0xff]  }
 0x135   :  { %3329 = vmatprep.subr.bf16.mxu0 %v3467_v40 }
 0x136   :  { %v329_v46 = vmax.f32 %v313_v43, 0.0  ;;  %v340_v49 = vpack.c.bf16 %v331_v44, %v330_v47 }
 0x138   :  { %v339_v48 = vpack.c.bf16 %v329_v46, %v328_v45  ;;  %3330 = vmatpush3.bf16.msra.mxu0 %v3468_v51 }
 0x139   :  { %3331 = vmatprep.subr.bf16.mxu0 %v3469_v52 }
 0x13a   :  { %3443 = vmatprep.mubr.msk.bf16.mxu1 %vm373_vm2, %v339_v48 }
 0x13b   :  { %3444 = vmatmul.mubr.msk.bf16.gmra.mxu1 %vm373_vm2, %v340_v49 }
 0x13c   :  { %3332 = vmatpush3.bf16.msra.mxu0 %v3470_v53 }
 0x13d   :  { %3333 = vmatprep.subr.bf16.mxu0 %v3471_v54 }
 0x140   :  { %3334 = vmatpush3.bf16.msra.mxu0 %v3472_v55 }
 0x141   :  { %3335 = vmatprep.subr.bf16.mxu0 %v3473_v56 }
 0x144   :  { %3336 = vmatpush3.bf16.msra.mxu0 %v3474_v57 }
 0x145   :  { %3337 = vmatprep.subr.bf16.mxu0 %v3475_v58 }
 0x148   :  { %3338 = vmatpush3.bf16.msra.mxu0 %v3476_v59 }
 0x149   :  { %3339 = vmatprep.subr.bf16.mxu0 %v3477_v61 }
 0x14c   :  { %3340 = vmatpush3.bf16.msra.mxu0 %v3478_v62 }
 0x14d   :  { %3341 = vmatprep.subr.bf16.mxu0 %v3479_v63 }
 0x150   :  { %3342 = vmatpush3.bf16.msra.mxu0 %v3480_v1 }
 0x1e3   :  { %v3433_v3 = vpop.f32.mrf.mxu1 }
 0x1e4   :  { %v501_v4 = vmul.f32 %v3433_v3, %v4172_v0 }
 0x1e5   :  { %v432_v5 = vpop.f32.mrf.mxu1 }
 0x1e6   :  { %v521_v6 = vadd.f32 %v4178_v2, %v501_v4  ;;  %v499_v7 = vmul.f32 %v4172_v0, %v432_v5 }
 0x1e7   :  { %v3434_v8 = vpop.f32.mrf.mxu1 }
 0x1e8   :  { %v537_v9 = vmax.f32 %v521_v6, 0.0  ;;  %v519_v10 = vadd.f32 %v4178_v2, %v499_v7  ;;  %v502_v11 = vmul.f32 %v3434_v8, %v4172_v0 }
 0x1e9   :  { %v435_v12 = vpop.f32.mrf.mxu1 }
 0x1ea   :  { %v566_v13 = vsel %vm551_vm3, %v537_v9, -inf  ;;  %v679_v14 = vsel %vm664_vm4, %v537_v9, -inf  ;;  %v792_v15 = vsel %vm777_vm5, %v537_v9, -inf  ;;  %v905_v16 = vsel %vm890_vm6, %v537_v9, -inf }
 0x1eb   :  { %v567_v17 = vrot.slane %v566_v13, 4  ;;  %v680_v18 = vrot.slane %v679_v14, 4  ;;  %v793_v19 = vrot.slane %v792_v15, 4  ;;  %v906_v20 = vrot.slane %v905_v16, 4  ;;  %v3437_v45 = vpop.f32.mrf.mxu1 }
 0x1ec   :  { %v535_v21 = vmax.f32 %v519_v10, 0.0  ;;  %v522_v22 = vadd.f32 %v4178_v2, %v502_v11  ;;  %v500_v23 = vmul.f32 %v4172_v0, %v435_v12  ;;  %v505_v55 = vmul.f32 %v3437_v45, %v4172_v0 }
 0x1ed   :  { %v568_v24 = vmax.f32 %v566_v13, %v567_v17  ;;  %v681_v25 = vmax.f32 %v679_v14, %v680_v18  ;;  %v794_v26 = vmax.f32 %v792_v15, %v793_v19  ;;  %v907_v27 = vmax.f32 %v905_v16, %v906_v20  ;;  %v448_v9 = vpop.f32.mrf.mxu1  ;;  %v3481_v18 = vld [vmem:[#allocation8 + $0x70] ss:$8 sps:$4 sm:$0xff]  }
 0x1ee   :  { %v552_v28 = vsel %vm551_vm3, %v535_v21, -inf  ;;  %v665_v29 = vsel %vm664_vm4, %v535_v21, -inf  ;;  %v778_v30 = vsel %vm777_vm5, %v535_v21, -inf  ;;  %v891_v33 = vsel %vm890_vm6, %v535_v21, -inf }
 0x1ef   :  { %v569_v34 = vrot.slane %v568_v24, 2  ;;  %v682_v37 = vrot.slane %v681_v25, 2  ;;  %v795_v38 = vrot.slane %v794_v26, 2  ;;  %v908_v39 = vrot.slane %v907_v27, 2 }
 0x1f0   :  { %v553_v41 = vrot.slane %v552_v28, 4  ;;  %v666_v42 = vrot.slane %v665_v29, 4  ;;  %v779_v43 = vrot.slane %v778_v30, 4  ;;  %v892_v44 = vrot.slane %v891_v33, 4 }
 0x1f1   :  { %v570_v46 = vmax.f32 %v568_v24, %v569_v34  ;;  %v683_v47 = vmax.f32 %v681_v25, %v682_v37  ;;  %v796_v48 = vmax.f32 %v794_v26, %v795_v38  ;;  %v909_v49 = vmax.f32 %v907_v27, %v908_v39  ;;  %v3486_v24 = vld [vmem:[#allocation8 + $0x64] ss:$8 sps:$4 sm:$0xff]  }
 0x1f2   :  { %v554_v35 = vmax.f32 %v552_v28, %v553_v41  ;;  %v667_v50 = vmax.f32 %v665_v29, %v666_v42  ;;  %v780_v40 = vmax.f32 %v778_v30, %v779_v43  ;;  %v893_v51 = vmax.f32 %v891_v33, %v892_v44  ;;  %v3484_v42 = vld [vmem:[#allocation8 + $0x60] ss:$8 sps:$4 sm:$0xff]  }
 0x1f3   :  { %v571_v52 = vrot.slane %v570_v46, 1  ;;  %v684_v53 = vrot.slane %v683_v47, 1  ;;  %v797_v54 = vrot.slane %v796_v48, 1  ;;  %v910_v62 = vrot.slane %v909_v49, 1 }
 0x1f4   :  { %v555_v56 = vrot.slane %v554_v35, 2  ;;  %v668_v57 = vrot.slane %v667_v50, 2  ;;  %v781_v58 = vrot.slane %v780_v40, 2  ;;  %v894_v59 = vrot.slane %v893_v51, 2 }
 0x1f5   :  { %v4196_v60 = vmax.f32 %v570_v46, %v571_v52  ;;  %v4198_v61 = vmax.f32 %v683_v47, %v684_v53  ;;  %v4200_v5 = vmax.f32 %v796_v48, %v797_v54  ;;  %v538_v6 = vmax.f32 %v522_v22, 0.0  ;;  %v3489_v47 = vld [vmem:[#allocation8 + $0x54] ss:$8 sps:$4 sm:$0xff]   ;;  %v3438_v54 = vpop.f32.mrf.mxu1 }
 0x1f6   :  { %v556_v63 = vmax.f32 %v554_v35, %v555_v56  ;;  %v669_v1 = vmax.f32 %v667_v50, %v668_v57  ;;  %v782_v3 = vmax.f32 %v780_v40, %v781_v58  ;;  %v895_v4 = vmax.f32 %v893_v51, %v894_v59  ;;  %v3487_v59 = vld [vmem:[#allocation8 + $0x50] ss:$8 sps:$4 sm:$0xff]  }
 0x1f7   :  { %v520_v7 = vadd.f32 %v4178_v2, %v500_v23  ;;  %v525_v8 = vadd.f32 %v4178_v2, %v505_v55  ;;  %v573_v14 = vsel %vm551_vm3, %v538_v6, -inf  ;;  %v686_v15 = vsel %vm664_vm4, %v538_v6, -inf  ;;  %v3483_v23 = vld [vmem:[#allocation8 + $0x74] ss:$8 sps:$4 sm:$0xff]  }
 0x1f8   :  { %v557_v10 = vrot.slane %v556_v63, 1  ;;  %v670_v11 = vrot.slane %v669_v1, 1  ;;  %v783_v12 = vrot.slane %v782_v3, 1  ;;  %v896_v13 = vrot.slane %v895_v4, 1  ;;  %1550 = vmatprep.subr.bf16.mxu1 %v3483_v23 }
 0x1f9   :  { %v799_v16 = vsel %vm777_vm5, %v538_v6, -inf  ;;  %v912_v17 = vsel %vm890_vm6, %v538_v6, -inf  ;;  %v4208_v19 = vmax.f32 %v909_v49, %v910_v62  ;;  %v503_v22 = vmul.f32 %v4172_v0, %v448_v9  ;;  %1551 = vmatpush1.bf16.msra.mxu1 %v3481_v18  ;;  %v3490_v18 = vld [vmem:[#allocation8 + $0x40] ss:$8 sps:$4 sm:$0xff]  }
 0x1fa   :  { %v4210_v20 = vmax.f32 %v556_v63, %v557_v10  ;;  %v4212_v21 = vmax.f32 %v669_v1, %v670_v11  ;;  %v574_v25 = vrot.slane %v573_v14, 4  ;;  %v687_v26 = vrot.slane %v686_v15, 4  ;;  %1552 = vmatprep.subr.bf16.mxu1 %v3486_v24 }
 0x1fb   :  { %4632 = vst [vmem:[#allocation22_spill] sm:$0xff] %v4208_v19  ;;  %v800_v27 = vrot.slane %v799_v16, 4  ;;  %v913_v28 = vrot.slane %v912_v17, 4  ;;  %v4215_v29 = vmax.f32 %v782_v3, %v783_v12  ;;  %v4217_v30 = vmax.f32 %v895_v4, %v896_v13  ;;  %v3492_v4 = vld [vmem:[#allocation8 + $0x44] ss:$8 sps:$4 sm:$0xff]  }
 0x1fc   :  { %v536_v33 = vmax.f32 %v520_v7, 0.0  ;;  %v541_v34 = vmax.f32 %v525_v8, 0.0  ;;  %v575_v37 = vmax.f32 %v573_v14, %v574_v25  ;;  %v688_v38 = vmax.f32 %v686_v15, %v687_v26 }
 0x1fd   :  { %4633 = vst [vmem:[#allocation23_spill] sm:$0xff] %v4217_v30  ;;  %v801_v39 = vmax.f32 %v799_v16, %v800_v27  ;;  %v914_v41 = vmax.f32 %v912_v17, %v913_v28  ;;  %1553 = vmatpush1.bf16.msra.mxu1 %v3484_v42  ;;  %v523_v8 = vadd.f32 %v4178_v2, %v503_v22  ;;  %v3495_v22 = vld [vmem:[#allocation8 + $0x34] ss:$8 sps:$4 sm:$0xff]  }
 0x1fe   :  { %v559_v43 = vsel %vm551_vm3, %v536_v33, -inf  ;;  %v672_v44 = vsel %vm664_vm4, %v536_v33, -inf  ;;  %v785_v45 = vsel %vm777_vm5, %v536_v33, -inf  ;;  %v898_v46 = vsel %vm890_vm6, %v536_v33, -inf  ;;  %1554 = vmatprep.subr.bf16.mxu1 %v3489_v47  ;;  %v451_v47 = vpop.f32.mrf.mxu1 }
 0x1ff   :  { %v576_v48 = vrot.slane %v575_v37, 2  ;;  %v689_v49 = vrot.slane %v688_v38, 2  ;;  %v802_v35 = vrot.slane %v801_v39, 2  ;;  %v915_v50 = vrot.slane %v914_v41, 2 }
 0x200   :  { %v560_v40 = vrot.slane %v559_v43, 4  ;;  %v673_v51 = vrot.slane %v672_v44, 4  ;;  %v786_v52 = vrot.slane %v785_v45, 4  ;;  %v899_v53 = vrot.slane %v898_v46, 4 }
 0x201   :  { %v577_v55 = vmax.f32 %v575_v37, %v576_v48  ;;  %v690_v56 = vmax.f32 %v688_v38, %v689_v49  ;;  %v803_v57 = vmax.f32 %v801_v39, %v802_v35  ;;  %v916_v58 = vmax.f32 %v914_v41, %v915_v50  ;;  %1555 = vmatpush1.bf16.msra.mxu1 %v3487_v59  ;;  %v3493_v48 = vld [vmem:[#allocation8 + $0x30] ss:$8 sps:$4 sm:$0xff]  }
 0x202   :  { %v561_v62 = vmax.f32 %v559_v43, %v560_v40  ;;  %v674_v63 = vmax.f32 %v672_v44, %v673_v51  ;;  %v787_v1 = vmax.f32 %v785_v45, %v786_v52  ;;  %v900_v3 = vmax.f32 %v898_v46, %v899_v53  ;;  %1556 = vmatprep.subr.bf16.mxu1 %v3492_v4 }
 0x203   :  { %v578_v6 = vrot.slane %v577_v55, 1  ;;  %v691_v7 = vrot.slane %v690_v56, 1  ;;  %v506_v9 = vmul.f32 %v3438_v54, %v4172_v0  ;;  %v804_v16 = vrot.slane %v803_v57, 1 }
 0x204   :  { %v562_v10 = vrot.slane %v561_v62, 2  ;;  %v675_v11 = vrot.slane %v674_v63, 2  ;;  %v788_v12 = vrot.slane %v787_v1, 2  ;;  %v901_v13 = vrot.slane %v900_v3, 2 }
 0x205   :  { %v4225_v14 = vmax.f32 %v577_v55, %v578_v6  ;;  %v4227_v15 = vmax.f32 %v690_v56, %v691_v7  ;;  %v917_v17 = vrot.slane %v916_v58, 1  ;;  %v594_v27 = vsel %vm551_vm3, %v541_v34, -inf  ;;  %1557 = vmatpush1.bf16.msra.mxu1 %v3490_v18  ;;  %v3441_v18 = vpop.f32.mrf.mxu1 }
 0x206   :  { %v563_v23 = vmax.f32 %v561_v62, %v562_v10  ;;  %v676_v24 = vmax.f32 %v674_v63, %v675_v11  ;;  %v789_v25 = vmax.f32 %v787_v1, %v788_v12  ;;  %v902_v26 = vmax.f32 %v900_v3, %v901_v13  ;;  %1558 = vmatprep.subr.bf16.mxu1 %v3495_v22  ;;  %v3496_v3 = vld [vmem:[#allocation8 + $0x20] ss:$8 sps:$4 sm:$0xff]   ;;  %v3499_v22 = vld [vmem:[#allocation8 + $0x10] ss:$8 sps:$4 sm:$0xff]  }
 0x207   :  { %v707_v28 = vsel %vm664_vm4, %v541_v34, -inf  ;;  %v820_v33 = vsel %vm777_vm5, %v541_v34, -inf  ;;  %v933_v37 = vsel %vm890_vm6, %v541_v34, -inf  ;;  %v595_v43 = vrot.slane %v594_v27, 4  ;;  %v3498_v34 = vld [vmem:[#allocation8 + $0x24] ss:$8 sps:$4 sm:$0xff]  }
 0x208   :  { %v564_v38 = vrot.slane %v563_v23, 1  ;;  %v677_v39 = vrot.slane %v676_v24, 1  ;;  %v790_v41 = vrot.slane %v789_v25, 1  ;;  %v903_v42 = vrot.slane %v902_v26, 1 }
 0x209   :  { %v708_v44 = vrot.slane %v707_v28, 4  ;;  %v821_v45 = vrot.slane %v820_v33, 4  ;;  %v934_v46 = vrot.slane %v933_v37, 4  ;;  %v4233_v49 = vmax.f32 %v803_v57, %v804_v16  ;;  %1559 = vmatpush1.bf16.msra.mxu1 %v3493_v48 }
 0x20a   :  { %v4235_v35 = vmax.f32 %v916_v58, %v917_v17  ;;  %v565_v50 = vmax.f32 %v563_v23, %v564_v38  ;;  %v4237_v40 = vmax.f32 %v676_v24, %v677_v39  ;;  %v4239_v51 = vmax.f32 %v789_v25, %v790_v41  ;;  %1560 = vmatprep.subr.bf16.mxu1 %v3498_v34  ;;  %v3504_v38 = vld [vmem:[#allocation8 + $0x4] ss:$8 sps:$4 sm:$0xff]  }
 0x20b   :  { %4634 = vst [vmem:[#allocation24_spill] sm:$0xff] %v4233_v49  ;;  %v596_v52 = vmax.f32 %v594_v27, %v595_v43  ;;  %v4241_v53 = vmax.f32 %v707_v28, %v708_v44  ;;  %v4243_v54 = vmax.f32 %v820_v33, %v821_v45  ;;  %v539_v56 = vmax.f32 %v523_v8, 0.0  ;;  %v3501_v8 = vld [vmem:[#allocation8 + $0x14] ss:$8 sps:$4 sm:$0xff]  }
 0x20c   :  { %4635 = vst [vmem:[#allocation25_spill] sm:$0xff] %v4235_v35  ;;  %v1020_v55 = vsel %vm1019_vm7, %v565_v50, %v4210_v20  ;;  %v526_v57 = vadd.f32 %v4178_v2, %v506_v9  ;;  %v504_v58 = vmul.f32 %v4172_v0, %v451_v47  ;;  %v4249_v59 = vmax.f32 %v902_v26, %v903_v42 }
 0x20d   :  { %v4253_v62 = vsel %vm1021_vm8, %v4196_v60, %v1020_v55  ;;  %v597_v63 = vrot.slane %v596_v52, 2  ;;  %v4255_v1 = vmax.f32 %v933_v37, %v934_v46  ;;  %v580_v20 = vsel %vm551_vm3, %v539_v56, -inf  ;;  %1561 = vmatpush1.bf16.msra.mxu1 %v3496_v3  ;;  %v3502_v55 = vld [vmem:[#allocation8] ss:$8 sps:$4 sm:$0xff]   ;;  %v3507_v3 = vld [vmem:[#allocation8 + $0xf4] ss:$8 sps:$4 sm:$0xff]  }
 0x20e   :  { %4636 = vst [vmem:[#allocation26_spill] sm:$0xff] %v4249_v59  ;;  %v693_v6 = vsel %vm664_vm4, %v539_v56, -inf  ;;  %v806_v7 = vsel %vm777_vm5, %v539_v56, -inf  ;;  %v581_v10 = vrot.slane %v580_v20, 4  ;;  %v919_v13 = vsel %vm890_vm6, %v539_v56, -inf  ;;  %1562 = vmatprep.subr.bf16.mxu1 %v3501_v8 }
 0x20f   :  { %4637 = vst [vmem:[#allocation27_spill] sm:$0xff] %v4255_v1  ;;  %v598_v9 = vmax.f32 %v596_v52, %v597_v63  ;;  %v694_v11 = vrot.slane %v693_v6, 4  ;;  %v807_v60 = vrot.slane %v806_v7, 4  ;;  %v542_v16 = vmax.f32 %v526_v57, 0.0 }
 0x210   :  { %v524_v17 = vadd.f32 %v4178_v2, %v504_v58  ;;  %v582_v24 = vmax.f32 %v580_v20, %v581_v10  ;;  %v920_v27 = vrot.slane %v919_v13, 4  ;;  %v509_v43 = vmul.f32 %v3441_v18, %v4172_v0  ;;  %v464_v10 = vpop.f32.mrf.mxu1 }
 0x211   :  { %v599_v23 = vrot.slane %v598_v9, 1  ;;  %v695_v25 = vmax.f32 %v693_v6, %v694_v11  ;;  %v808_v26 = vmax.f32 %v806_v7, %v807_v60  ;;  %v601_v28 = vsel %vm551_vm3, %v542_v16, -inf  ;;  %1563 = vmatpush1.bf16.msra.mxu1 %v3499_v22 }
 0x212   :  { %v714_v33 = vsel %vm664_vm4, %v542_v16, -inf  ;;  %v827_v37 = vsel %vm777_vm5, %v542_v16, -inf  ;;  %v583_v39 = vrot.slane %v582_v24, 2  ;;  %v921_v44 = vmax.f32 %v919_v13, %v920_v27  ;;  %1564 = vmatprep.subr.bf16.mxu1 %v3504_v38 }
 0x213   :  { %v696_v41 = vrot.slane %v695_v25, 2  ;;  %v809_v42 = vrot.slane %v808_v26, 2  ;;  %v602_v45 = vrot.slane %v601_v28, 4  ;;  %v715_v46 = vrot.slane %v714_v33, 4 }
 0x214   :  { %v828_v47 = vrot.slane %v827_v37, 4  ;;  %v584_v48 = vmax.f32 %v582_v24, %v583_v39  ;;  %v940_v52 = vsel %vm890_vm6, %v542_v16, -inf  ;;  %v4269_v56 = vmax.f32 %v598_v9, %v599_v23 }
 0x215   :  { %v697_v50 = vmax.f32 %v695_v25, %v696_v41  ;;  %v810_v34 = vmax.f32 %v808_v26, %v809_v42  ;;  %v922_v58 = vrot.slane %v921_v44, 2  ;;  %v603_v63 = vmax.f32 %v601_v28, %v602_v45  ;;  %1565 = vmatpush1.bf16.msra.mxu1 %v3502_v55  ;;  %v3505_v25 = vld [vmem:[#allocation8 + $0xf0] ss:$8 sps:$4 sm:$0xff]   ;;  %v3442_v41 = vpop.f32.mrf.mxu1 }
 0x216   :  { %v585_v20 = vrot.slane %v584_v48, 1  ;;  %v4272_v8 = vmax.f32 %v714_v33, %v715_v46  ;;  %v941_v13 = vrot.slane %v940_v52, 4  ;;  %v540_v16 = vmax.f32 %v524_v17, 0.0  ;;  %1566 = vmatprep.subr.bf16.mxu1 %v3507_v3  ;;  %v3510_v33 = vld [vmem:[#allocation8 + $0xe4] ss:$8 sps:$4 sm:$0xff]  }
 0x217   :  { %v698_v6 = vrot.slane %v697_v50, 1  ;;  %v811_v7 = vrot.slane %v810_v34, 1  ;;  %v923_v11 = vmax.f32 %v921_v44, %v922_v58  ;;  %v604_v60 = vrot.slane %v603_v63, 2 }
 0x218   :  { %v4274_v18 = vmax.f32 %v584_v48, %v585_v20  ;;  %v4278_v23 = vmax.f32 %v827_v37, %v828_v47  ;;  %v529_v24 = vadd.f32 %v4178_v2, %v509_v43  ;;  %v587_v27 = vsel %vm551_vm3, %v540_v16, -inf }
 0x219   :  { %v4276_v9 = vmax.f32 %v697_v50, %v698_v6  ;;  %v4281_v26 = vmax.f32 %v810_v34, %v811_v7  ;;  %v605_v22 = vmax.f32 %v603_v63, %v604_v60  ;;  %v700_v28 = vsel %vm664_vm4, %v540_v16, -inf  ;;  %1567 = vmatpush2.bf16.msra.mxu1 %v3505_v25  ;;  %v3508_v34 = vld [vmem:[#allocation8 + $0xe0] ss:$8 sps:$4 sm:$0xff]  }
 0x21a   :  { %v588_v17 = vrot.slane %v587_v27, 4  ;;  %v701_v38 = vrot.slane %v700_v28, 4  ;;  %v813_v39 = vsel %vm777_vm5, %v540_v16, -inf  ;;  %v926_v37 = vsel %vm890_vm6, %v540_v16, -inf  ;;  %1568 = vmatprep.subr.bf16.mxu1 %v3510_v33 }
 0x21b   :  { %4638 = vst [vmem:[#allocation28_spill] sm:$0xff] %v4281_v26  ;;  %v924_v42 = vrot.slane %v923_v11, 1  ;;  %v4287_v43 = vmax.f32 %v940_v52, %v941_v13  ;;  %v814_v44 = vrot.slane %v813_v39, 4  ;;  %v927_v45 = vrot.slane %v926_v37, 4 }
 0x21c   :  { %v606_v46 = vrot.slane %v605_v22, 1  ;;  %v589_v47 = vmax.f32 %v587_v27, %v588_v17  ;;  %v702_v48 = vmax.f32 %v700_v28, %v701_v38  ;;  %v545_v50 = vmax.f32 %v529_v24, 0.0 }
 0x21d   :  { %4639 = vst [vmem:[#allocation29_spill] sm:$0xff] %v4287_v43  ;;  %v815_v55 = vmax.f32 %v813_v39, %v814_v44  ;;  %v928_v58 = vmax.f32 %v926_v37, %v927_v45  ;;  %v507_v63 = vmul.f32 %v4172_v0, %v464_v10  ;;  %v510_v3 = vmul.f32 %v3442_v41, %v4172_v0 }
 0x21e   :  { %v590_v20 = vrot.slane %v589_v47, 2  ;;  %v703_v6 = vrot.slane %v702_v48, 2  ;;  %v622_v52 = vsel %vm551_vm3, %v545_v50, -inf  ;;  %v735_v7 = vsel %vm664_vm4, %v545_v50, -inf  ;;  %1569 = vmatpush2.bf16.msra.mxu1 %v3508_v34 }
 0x21f   :  { %v816_v60 = vrot.slane %v815_v55, 2  ;;  %v929_v13 = vrot.slane %v928_v58, 2  ;;  %v623_v16 = vrot.slane %v622_v52, 4  ;;  %v736_v27 = vrot.slane %v735_v7, 4 }
 0x220   :  { %v4293_v24 = vmax.f32 %v923_v11, %v924_v42  ;;  %v591_v25 = vmax.f32 %v589_v47, %v590_v20  ;;  %v848_v28 = vsel %vm777_vm5, %v545_v50, -inf  ;;  %v961_v10 = vsel %vm890_vm6, %v545_v50, -inf  ;;  %v467_v11 = vpop.f32.mrf.mxu1 }
 0x221   :  { %v4297_v17 = vmax.f32 %v605_v22, %v606_v46  ;;  %v4299_v33 = vmax.f32 %v702_v48, %v703_v6  ;;  %v624_v38 = vmax.f32 %v622_v52, %v623_v16  ;;  %v737_v39 = vmax.f32 %v735_v7, %v736_v27 }
 0x222   :  { %4640 = vst [vmem:[#allocation30_spill] sm:$0xff] %v4293_v24  ;;  %v4301_v37 = vmax.f32 %v815_v55, %v816_v60  ;;  %v849_v41 = vrot.slane %v848_v28, 4  ;;  %v962_v44 = vrot.slane %v961_v10, 4  ;;  %v527_v45 = vadd.f32 %v4178_v2, %v507_v63 }
 0x223   :  { %v4304_v42 = vmax.f32 %v928_v58, %v929_v13  ;;  %v625_v47 = vrot.slane %v624_v38, 2  ;;  %v738_v20 = vrot.slane %v737_v39, 2  ;;  %v530_v50 = vadd.f32 %v4178_v2, %v510_v3 }
 0x224   :  { %v592_v34 = vrot.slane %v591_v25, 1  ;;  %v850_v22 = vmax.f32 %v848_v28, %v849_v41  ;;  %v963_v46 = vmax.f32 %v961_v10, %v962_v44  ;;  %v543_v48 = vmax.f32 %v527_v45, 0.0 }
 0x225   :  { %4641 = vst [vmem:[#allocation31_spill] sm:$0xff] %v4304_v42  ;;  %v626_v6 = vmax.f32 %v624_v38, %v625_v47  ;;  %v739_v52 = vmax.f32 %v737_v39, %v738_v20  ;;  %v546_v7 = vmax.f32 %v530_v50, 0.0  ;;  %v508_v55 = vmul.f32 %v4172_v0, %v467_v11 }
 0x226   :  { %v851_v60 = vrot.slane %v850_v22, 2  ;;  %v964_v16 = vrot.slane %v963_v46, 2  ;;  %v608_v63 = vsel %vm551_vm3, %v543_v48, -inf  ;;  %v721_v58 = vsel %vm664_vm4, %v543_v48, -inf }
 0x227   :  { %v627_v13 = vrot.slane %v626_v6, 1  ;;  %v740_v27 = vrot.slane %v739_v52, 1  ;;  %v609_v57 = vrot.slane %v608_v63, 4  ;;  %v722_v12 = vrot.slane %v721_v58, 4 }
 0x228   :  { %v852_v3 = vmax.f32 %v850_v22, %v851_v60  ;;  %v965_v4 = vmax.f32 %v963_v46, %v964_v16  ;;  %v834_v28 = vsel %vm777_vm5, %v543_v48, -inf  ;;  %v947_v10 = vsel %vm890_vm6, %v543_v48, -inf }
 0x229   :  { %v4312_v38 = vmax.f32 %v591_v25, %v592_v34  ;;  %v610_v39 = vmax.f32 %v608_v63, %v609_v57  ;;  %v723_v41 = vmax.f32 %v721_v58, %v722_v12  ;;  %v528_v44 = vadd.f32 %v4178_v2, %v508_v55 }
 0x22a   :  { %v4315_v45 = vmax.f32 %v626_v6, %v627_v13  ;;  %v4317_v11 = vmax.f32 %v739_v52, %v740_v27  ;;  %v835_v47 = vrot.slane %v834_v28, 4  ;;  %v948_v20 = vrot.slane %v947_v10, 4 }
 0x22b   :  { %v611_v50 = vrot.slane %v610_v39, 2  ;;  %v724_v31 = vrot.slane %v723_v41, 2  ;;  %v629_v22 = vsel %vm551_vm3, %v546_v7, -inf  ;;  %v742_v46 = vsel %vm664_vm4, %v546_v7, -inf }
 0x22c   :  { %v853_v60 = vrot.slane %v852_v3, 1  ;;  %v966_v48 = vrot.slane %v965_v4, 1  ;;  %v836_v25 = vmax.f32 %v834_v28, %v835_v47  ;;  %v949_v34 = vmax.f32 %v947_v10, %v948_v20 }
 0x22d   :  { %v612_v57 = vmax.f32 %v610_v39, %v611_v50  ;;  %v725_v12 = vmax.f32 %v723_v41, %v724_v31  ;;  %v630_v16 = vrot.slane %v629_v22, 4  ;;  %v743_v55 = vrot.slane %v742_v46, 4  ;;  %v3445_v41 = vpop.f32.mrf.mxu1 }
 0x22e   :  { %v837_v6 = vrot.slane %v836_v25, 2  ;;  %v950_v63 = vrot.slane %v949_v34, 2  ;;  %v855_v52 = vsel %vm777_vm5, %v546_v7, -inf  ;;  %v968_v58 = vsel %vm890_vm6, %v546_v7, -inf }
 0x22f   :  { %v613_v13 = vrot.slane %v612_v57, 1  ;;  %v726_v27 = vrot.slane %v725_v12, 1  ;;  %v631_v36 = vmax.f32 %v629_v22, %v630_v16  ;;  %v744_v32 = vmax.f32 %v742_v46, %v743_v55 }
 0x230   :  { %v838_v24 = vmax.f32 %v836_v25, %v837_v6  ;;  %v951_v35 = vmax.f32 %v949_v34, %v950_v63  ;;  %v856_v19 = vrot.slane %v855_v52, 4  ;;  %v969_v59 = vrot.slane %v968_v58, 4  ;;  %v480_v63 = vpop.f32.mrf.mxu1 }
 0x231   :  { %v4323_v28 = vmax.f32 %v852_v3, %v853_v60  ;;  %v4325_v10 = vmax.f32 %v965_v4, %v966_v48  ;;  %v632_v31 = vrot.slane %v631_v36, 2  ;;  %v745_v39 = vrot.slane %v744_v32, 2 }
 0x232   :  { %v4327_v47 = vmax.f32 %v612_v57, %v613_v13  ;;  %v839_v20 = vrot.slane %v838_v24, 1  ;;  %v857_v50 = vmax.f32 %v855_v52, %v856_v19  ;;  %v970_v7 = vmax.f32 %v968_v58, %v969_v59 }
 0x233   :  { %4642 = vst [vmem:[#allocation32_spill] sm:$0xff] %v4323_v28  ;;  %4643 = vst [vmem:[#allocation33_spill] sm:$0xff] %v4325_v10  ;;  %v952_v30 = vrot.slane %v951_v35, 1  ;;  %v633_v43 = vmax.f32 %v631_v36, %v632_v31  ;;  %v746_v22 = vmax.f32 %v744_v32, %v745_v39  ;;  %v544_v46 = vmax.f32 %v528_v44, 0.0  ;;  %v3446_v10 = vpop.f32.mrf.mxu1 }
 0x234   :  { %v4329_v25 = vmax.f32 %v725_v12, %v726_v27  ;;  %v858_v34 = vrot.slane %v857_v50, 2  ;;  %v971_v16 = vrot.slane %v970_v7, 2  ;;  %v513_v3 = vmul.f32 %v3445_v41, %v4172_v0 }
 0x235   :  { %v634_v4 = vrot.slane %v633_v43, 1  ;;  %v747_v60 = vrot.slane %v746_v22, 1  ;;  %v615_v48 = vsel %vm551_vm3, %v544_v46, -inf  ;;  %v728_v57 = vsel %vm664_vm4, %v544_v46, -inf }
 0x236   :  { %v859_v55 = vmax.f32 %v857_v50, %v858_v34  ;;  %v972_v6 = vmax.f32 %v970_v7, %v971_v16  ;;  %v616_v19 = vrot.slane %v615_v48, 4  ;;  %v729_v59 = vrot.slane %v728_v57, 4 }
 0x237   :  { %v4334_v36 = vmax.f32 %v838_v24, %v839_v20  ;;  %v4336_v32 = vmax.f32 %v951_v35, %v952_v30  ;;  %v841_v44 = vsel %vm777_vm5, %v544_v46, -inf  ;;  %v954_v12 = vsel %vm890_vm6, %v544_v46, -inf }
 0x238   :  { %v860_v52 = vrot.slane %v859_v55, 1  ;;  %v973_v58 = vrot.slane %v972_v6, 1  ;;  %v617_v13 = vmax.f32 %v615_v48, %v616_v19  ;;  %v730_v27 = vmax.f32 %v728_v57, %v729_v59 }
 0x239   :  { %4644 = vst [vmem:[#allocation34_spill] sm:$0xff] %v4336_v32  ;;  %v842_v31 = vrot.slane %v841_v44, 4  ;;  %v955_v39 = vrot.slane %v954_v12, 4  ;;  %v533_v41 = vadd.f32 %v4178_v2, %v513_v3  ;;  %v511_v50 = vmul.f32 %v4172_v0, %v480_v63 }
 0x23a   :  { %v4342_v7 = vmax.f32 %v633_v43, %v634_v4  ;;  %v4344_v24 = vmax.f32 %v746_v22, %v747_v60  ;;  %v618_v30 = vrot.slane %v617_v13, 2  ;;  %v731_v35 = vrot.slane %v730_v27, 2 }
 0x23b   :  { %v4346_v20 = vmax.f32 %v859_v55, %v860_v52  ;;  %v843_v34 = vmax.f32 %v841_v44, %v842_v31  ;;  %v956_v46 = vmax.f32 %v954_v12, %v955_v39  ;;  %v549_v16 = vmax.f32 %v533_v41, 0.0 }
 0x23c   :  { %v4348_v48 = vmax.f32 %v972_v6, %v973_v58  ;;  %v619_v57 = vmax.f32 %v617_v13, %v618_v30  ;;  %v732_v19 = vmax.f32 %v730_v27, %v731_v35  ;;  %v531_v3 = vadd.f32 %v4178_v2, %v511_v50  ;;  %v483_v58 = vpop.f32.mrf.mxu1 }
 0x23d   :  { %4645 = vst [vmem:[#allocation35_spill] sm:$0xff] %v4346_v20  ;;  %v844_v59 = vrot.slane %v843_v34, 2  ;;  %v957_v63 = vrot.slane %v956_v46, 2  ;;  %v650_v43 = vsel %vm551_vm3, %v549_v16, -inf  ;;  %v763_v22 = vsel %vm664_vm4, %v549_v16, -inf }
 0x23e   :  { %4646 = vst [vmem:[#allocation36_spill] sm:$0xff] %v4348_v48  ;;  %v620_v4 = vrot.slane %v619_v57, 1  ;;  %v733_v60 = vrot.slane %v732_v19, 1  ;;  %v651_v55 = vrot.slane %v650_v43, 4  ;;  %v764_v52 = vrot.slane %v763_v22, 4 }
 0x23f   :  { %v845_v44 = vmax.f32 %v843_v34, %v844_v59  ;;  %v958_v12 = vmax.f32 %v956_v46, %v957_v63  ;;  %v876_v31 = vsel %vm777_vm5, %v549_v16, -inf  ;;  %v989_v6 = vsel %vm890_vm6, %v549_v16, -inf }
 0x240   :  { %v621_v13 = vmax.f32 %v619_v57, %v620_v4  ;;  %v652_v27 = vmax.f32 %v650_v43, %v651_v55  ;;  %v4355_v39 = vmax.f32 %v763_v22, %v764_v52  ;;  %v514_v41 = vmul.f32 %v3446_v10, %v4172_v0 }
 0x241   :  { %v846_v50 = vrot.slane %v845_v44, 1  ;;  %v959_v30 = vrot.slane %v958_v12, 1  ;;  %v877_v35 = vrot.slane %v876_v31, 4  ;;  %v990_v48 = vrot.slane %v989_v6, 4 }
 0x242   :  { %v4358_v32 = vmax.f32 %v732_v19, %v733_v60  ;;  %v653_v1 = vrot.slane %v652_v27, 2  ;;  %v547_v34 = vmax.f32 %v531_v3, 0.0  ;;  %v512_v46 = vmul.f32 %v4172_v0, %v483_v58 }
 0x243   :  { %v4361_v59 = vmax.f32 %v845_v44, %v846_v50  ;;  %v1033_v16 = vsel %vm1019_vm7, %v621_v13, %v4327_v47  ;;  %v4366_v63 = vmax.f32 %v876_v31, %v877_v35  ;;  %v4368_v43 = vmax.f32 %v989_v6, %v990_v48 }
 0x244   :  { %v654_v10 = vmax.f32 %v652_v27, %v653_v1  ;;  %v636_v22 = vsel %vm551_vm3, %v547_v34, -inf  ;;  %v749_v19 = vsel %vm664_vm4, %v547_v34, -inf  ;;  %v4372_v4 = vmax.f32 %v958_v12, %v959_v30 }
 0x245   :  { %4647 = vst [vmem:[#allocation37_spill] sm:$0xff] %v4368_v43  ;;  %v637_v3 = vrot.slane %v636_v22, 4  ;;  %v750_v0 = vrot.slane %v749_v19, 4  ;;  %v862_v60 = vsel %vm777_vm5, %v547_v34, -inf  ;;  %v4377_v47 = vsel %vm1021_vm8, %v4315_v45, %v1033_v16 }
 0x246   :  { %4648 = vst [vmem:[#allocation38_spill] sm:$0xff] %v4372_v4  ;;  %v655_v55 = vrot.slane %v654_v10, 1  ;;  %v863_v52 = vrot.slane %v862_v60, 4  ;;  %v975_v1 = vsel %vm890_vm6, %v547_v34, -inf  ;;  %v534_v6 = vadd.f32 %v4178_v2, %v514_v41 }
 0x247   :  { %v638_v48 = vmax.f32 %v636_v22, %v637_v3  ;;  %v751_v44 = vmax.f32 %v749_v19, %v750_v0  ;;  %v976_v31 = vrot.slane %v975_v1, 4  ;;  %v532_v27 = vadd.f32 %v4178_v2, %v512_v46 }
 0x248   :  { %v864_v13 = vmax.f32 %v862_v60, %v863_v52  ;;  %v550_v35 = vmax.f32 %v534_v6, 0.0  ;;  %v4384_v16 = vmax.f32 %v654_v10, %v655_v55  ;;  %v705_v22 = vrot.slane %v4299_v33, 1 }
 0x249   :  { %v639_v50 = vrot.slane %v638_v48, 2  ;;  %v752_v30 = vrot.slane %v751_v44, 2  ;;  %v977_v45 = vmax.f32 %v975_v1, %v976_v31  ;;  %v548_v34 = vmax.f32 %v532_v27, 0.0 }
 0x24a   :  { %v865_v57 = vrot.slane %v864_v13, 2  ;;  %v657_v0 = vsel %vm551_vm3, %v550_v35, -inf  ;;  %v770_v60 = vsel %vm664_vm4, %v550_v35, -inf  ;;  %v883_v2 = vsel %vm777_vm5, %v550_v35, -inf }
 0x24b   :  { %v640_v19 = vmax.f32 %v638_v48, %v639_v50  ;;  %v753_v3 = vmax.f32 %v751_v44, %v752_v30  ;;  %v978_v41 = vrot.slane %v977_v45, 2  ;;  %v658_v58 = vrot.slane %v657_v0, 4 }
 0x24c   :  { %v866_v12 = vmax.f32 %v864_v13, %v865_v57  ;;  %v771_v10 = vrot.slane %v770_v60, 4  ;;  %v884_v6 = vrot.slane %v883_v2, 4  ;;  %v4391_v27 = vmax.f32 %v4299_v33, %v705_v22 }
 0x24d   :  { %v641_v46 = vrot.slane %v640_v19, 1  ;;  %v754_v52 = vrot.slane %v753_v3, 1  ;;  %v979_v1 = vmax.f32 %v977_v45, %v978_v41  ;;  %v659_v31 = vmax.f32 %v657_v0, %v658_v58 }
 0x24e   :  { %v867_v55 = vrot.slane %v866_v12, 1  ;;  %v996_v57 = vsel %vm890_vm6, %v550_v35, -inf  ;;  %v4649_v13 = vrot.slane %v4241_v53, 2  ;;  %v772_v4 = vmax.f32 %v770_v60, %v771_v10 }
 0x24f   :  { %v4393_v48 = vmax.f32 %v640_v19, %v641_v46  ;;  %v4395_v44 = vmax.f32 %v753_v3, %v754_v52  ;;  %v980_v45 = vrot.slane %v979_v1, 1  ;;  %v660_v41 = vrot.slane %v659_v31, 2 }
 0x250   :  { %v711_v50 = vmax.f32 %v4241_v53, %v4649_v13  ;;  %v4401_v30 = vmax.f32 %v866_v12, %v867_v55  ;;  %v4403_v58 = vmax.f32 %v883_v2, %v884_v6  ;;  %v643_v33 = vsel %vm551_vm3, %v548_v34, -inf }
 0x251   :  { %v756_v22 = vsel %vm664_vm4, %v548_v34, -inf  ;;  %v869_v19 = vsel %vm777_vm5, %v548_v34, -inf  ;;  %v661_v35 = vmax.f32 %v659_v31, %v660_v41  ;;  %v997_v3 = vrot.slane %v996_v57, 4 }
 0x252   :  { %4650 = vst [vmem:[#allocation39_spill] sm:$0xff] %v4401_v30  ;;  %v644_v0 = vrot.slane %v643_v33, 4  ;;  %v757_v46 = vrot.slane %v756_v22, 4  ;;  %v870_v53 = vrot.slane %v869_v19, 4  ;;  %v982_v12 = vsel %vm890_vm6, %v548_v34, -inf }
 0x253   :  { %v712_v52 = vrot.slane %v711_v50, 1  ;;  %v717_v60 = vrot.slane %v4272_v8, 2  ;;  %v662_v2 = vrot.slane %v661_v35, 1  ;;  %v983_v6 = vrot.slane %v982_v12, 4 }
 0x254   :  { %v645_v10 = vmax.f32 %v643_v33, %v644_v0  ;;  %v758_v55 = vmax.f32 %v756_v22, %v757_v46  ;;  %v4410_v13 = vmax.f32 %v979_v1, %v980_v45  ;;  %v871_v43 = vmax.f32 %v869_v19, %v870_v53 }
 0x255   :  { %v718_v31 = vmax.f32 %v4272_v8, %v717_v60  ;;  %v4651_v41 = vrot.slane %v4355_v39, 2  ;;  %v4416_v42 = vmax.f32 %v996_v57, %v997_v3  ;;  %v984_v26 = vmax.f32 %v982_v12, %v983_v6 }
 0x256   :  { %v646_v34 = vrot.slane %v645_v10, 2  ;;  %v759_v20 = vrot.slane %v758_v55, 2  ;;  %v872_v28 = vrot.slane %v871_v43, 2  ;;  %v713_v49 = vmax.f32 %v711_v50, %v712_v52 }
 0x257   :  { %v767_v30 = vmax.f32 %v4355_v39, %v4651_v41  ;;  %v719_v33 = vrot.slane %v718_v31, 1  ;;  %v773_v22 = vrot.slane %v772_v4, 2  ;;  %v663_v0 = vmax.f32 %v661_v35, %v662_v2 }
 0x258   :  { %v647_v1 = vmax.f32 %v645_v10, %v646_v34  ;;  %v760_v45 = vmax.f32 %v758_v55, %v759_v20  ;;  %v1058_v8 = vsel %vm1019_vm7, %v4237_v40, %v4212_v21  ;;  %v873_v19 = vmax.f32 %v871_v43, %v872_v28 }
 0x259   :  { %v985_v46 = vrot.slane %v984_v26, 2  ;;  %v768_v39 = vrot.slane %v767_v30, 1  ;;  %v774_v53 = vmax.f32 %v772_v4, %v773_v22  ;;  %v720_v3 = vmax.f32 %v718_v31, %v719_v33 }
 0x25a   :  { %v648_v57 = vrot.slane %v647_v1, 1  ;;  %v761_v60 = vrot.slane %v760_v45, 1  ;;  %v1059_v12 = vsel %vm1021_vm8, %v4198_v61, %v1058_v8  ;;  %v1065_v20 = vsel %vm1019_vm7, %v4358_v32, %v4329_v25 }
 0x25b   :  { %v775_v50 = vrot.slane %v774_v53, 1  ;;  %v1060_v35 = vsel %vm1023_vm9, %v4227_v15, %v1059_v12  ;;  %v1024_v21 = vsel %vm1023_vm9, %v4225_v14, %v4253_v62  ;;  %v1066_v61 = vsel %vm1021_vm8, %v4317_v11, %v1065_v20 }
 0x25c   :  { %v649_v40 = vmax.f32 %v647_v1, %v648_v57  ;;  %v762_v28 = vmax.f32 %v760_v45, %v761_v60  ;;  %v1061_v43 = vsel %vm1025_vm10, %v4276_v9, %v1060_v35  ;;  %v769_v4 = vmax.f32 %v767_v30, %v768_v39  ;;  %v4656_v60 = vld [vmem:[#allocation28_spill] sm:$0xff] }
 0x25d   :  { %v1062_v15 = vsel %vm1027_vm11, %v4391_v27, %v1061_v43  ;;  %v1067_v52 = vsel %vm1023_vm9, %v4344_v24, %v1066_v61  ;;  %v1026_v25 = vsel %vm1025_vm10, %v4274_v18, %v1024_v21  ;;  %v1035_v11 = vsel %vm1023_vm9, %v4342_v7, %v4377_v47  ;;  %v4662_v61 = vld [vmem:[#allocation29_spill] sm:$0xff] }
 0x25e   :  { %v1063_v14 = vsel %vm1029_vm12, %v713_v49, %v1062_v15  ;;  %v1068_v62 = vsel %vm1025_vm10, %v4395_v44, %v1067_v52  ;;  %v1028_v9 = vsel %vm1027_vm11, %v4312_v38, %v1026_v25  ;;  %v776_v32 = vmax.f32 %v774_v53, %v775_v50  ;;  %v4654_v53 = vld [vmem:[#allocation24_spill] sm:$0xff] }
 0x25f   :  { %v1069_v27 = vsel %vm1027_vm11, %v762_v28, %v1068_v62  ;;  %v1030_v24 = vsel %vm1029_vm12, %v4269_v56, %v1028_v9  ;;  %v1036_v18 = vsel %vm1025_vm10, %v4393_v48, %v1035_v11  ;;  %v1064_v49 = vsel %vm1031_vm13, %v720_v3, %v1063_v14  ;;  %v4655_v3 = vld [vmem:[#allocation32_spill] sm:$0xff]  ;;  %v4663_v11 = vld [vmem:[#allocation37_spill] sm:$0xff] }
 0x260   :  { %v1070_v44 = vsel %vm1029_vm12, %v769_v4, %v1069_v27  ;;  %v1037_v30 = vsel %vm1027_vm11, %v649_v40, %v1036_v18  ;;  %v818_v38 = vrot.slane %v4301_v37, 1  ;;  %v4652_v47 = vrot.slane %v4243_v54, 2  ;;  %v4660_v40 = vld [vmem:[#allocation27_spill] sm:$0xff] }
 0x261   :  { %v1071_v2 = vsel %vm1031_vm13, %v776_v32, %v1070_v44  ;;  %v1038_v7 = vsel %vm1029_vm12, %v4384_v16, %v1037_v30  ;;  %v830_v10 = vrot.slane %v4278_v23, 2  ;;  %v1032_v55 = vsel %vm1031_vm13, %v4297_v17, %v1030_v24  ;;  %v4665_v44 = vld [vmem:[#allocation23_spill] sm:$0xff]  ;;  %v4666_v30 = vld [vmem:[#allocation26_spill] sm:$0xff] }
 0x262   :  { %v824_v56 = vmax.f32 %v4243_v54, %v4652_v47  ;;  %v1139_v48 = vpack.c.bf16 %v1071_v2, %v1064_v49  ;;  %v1039_v6 = vsel %vm1031_vm13, %v663_v0, %v1038_v7  ;;  %v874_v31 = vrot.slane %v873_v19, 1  ;;  %v4667_v2 = vld [vmem:[#allocation34_spill] sm:$0xff] }
 0x263   :  { %v1138_v41 = vpack.c.bf16 %v1039_v6, %v1032_v55  ;;  %v831_v33 = vmax.f32 %v4278_v23, %v830_v10  ;;  %v4653_v22 = vrot.slane %v4366_v63, 2  ;;  %v819_v54 = vmax.f32 %v4301_v37, %v818_v38  ;;  %v4668_v7 = vld [vmem:[#allocation38_spill] sm:$0xff] }
 0x264   :  { %v825_v34 = vrot.slane %v824_v56, 1  ;;  %1303 = vmatprep.mubr.bf16.mxu0 %v1139_v48  ;;  %v886_v1 = vrot.slane %v4403_v58, 2  ;;  %v1090_v17 = vsel %vm1019_vm7, %v4239_v51, %v4215_v29  ;;  %v1097_v0 = vsel %vm1019_vm7, %v4361_v59, %v4334_v36 }
 0x265   :  { %v880_v16 = vmax.f32 %v4366_v63, %v4653_v22  ;;  %v986_v45 = vmax.f32 %v984_v26, %v985_v46  ;;  %1304 = vmatmul.mubr.bf16.vlgmr.msra.gmra.mxu0 %v1138_v41  ;;  %v875_v23 = vmax.f32 %v873_v19, %v874_v31  ;;  %v1091_v63 = vsel %vm1021_vm8, %v4200_v5, %v1090_v17  ;;  %v4657_v26 = vld [vmem:[#allocation35_spill] sm:$0xff]  ;;  %v4670_v22 = vld [vmem:[#allocation33_spill] sm:$0xff] }
 0x266   :  { %v832_v39 = vrot.slane %v831_v33, 1  ;;  %v887_v37 = vmax.f32 %v4403_v58, %v886_v1  ;;  %v1092_v57 = vsel %vm1023_vm9, %v4654_v53, %v1091_v63  ;;  %v1098_v29 = vsel %vm1021_vm8, %v4655_v3, %v1097_v0  ;;  %v4658_v19 = vld [vmem:[#allocation31_spill] sm:$0xff]  ;;  %v4671_v1 = vld [vmem:[#allocation25_spill] sm:$0xff]  ;;  %v4672_v0 = vld [vmem:[#allocation36_spill] sm:$0xff] }
 0x267   :  { %v881_v8 = vrot.slane %v880_v16, 1  ;;  %v826_v51 = vmax.f32 %v824_v56, %v825_v34  ;;  %v1093_v36 = vsel %vm1025_vm10, %v4656_v60, %v1092_v57  ;;  %v1099_v59 = vsel %vm1023_vm9, %v4657_v26, %v1098_v29  ;;  %v4659_v58 = vld [vmem:[#allocation39_spill] sm:$0xff]  ;;  %v4669_v34 = vld [vmem:[#allocation22_spill] sm:$0xff] }
 0x268   :  { %v931_v46 = vrot.slane %v4658_v19, 1  ;;  %v888_v5 = vrot.slane %v887_v37, 1  ;;  %v1094_v50 = vsel %vm1027_vm11, %v819_v54, %v1093_v36  ;;  %v1100_v35 = vsel %vm1025_vm10, %v4659_v58, %v1099_v59  ;;  %v4673_v63 = vld [vmem:[#allocation30_spill] sm:$0xff]  ;;  %v3511_v26 = vld [vmem:[#allocation8 + $0xd0] ss:$8 sps:$4 sm:$0xff]  }
 0x269   :  { %v882_v12 = vmax.f32 %v880_v16, %v881_v8  ;;  %v1095_v20 = vsel %vm1029_vm12, %v826_v51, %v1094_v50  ;;  %v1101_v21 = vsel %vm1027_vm11, %v875_v23, %v1100_v35  ;;  %v4661_v28 = vrot.slane %v4660_v40, 2  ;;  %v3513_v59 = vld [vmem:[#allocation8 + $0xd4] ss:$8 sps:$4 sm:$0xff]   ;;  %v3522_v50 = vld [vmem:[#allocation8 + $0xa4] ss:$8 sps:$4 sm:$0xff]  }
 0x26a   :  { %v943_v4 = vrot.slane %v4662_v61, 2  ;;  %v833_v15 = vmax.f32 %v831_v33, %v832_v39  ;;  %v889_v52 = vmax.f32 %v887_v37, %v888_v5  ;;  %v987_v14 = vrot.slane %v986_v45, 1  ;;  %1570 = vmatprep.subr.bf16.mxu1 %v3513_v59  ;;  %v3520_v5 = vld [vmem:[#allocation8 + $0xa0] ss:$8 sps:$4 sm:$0xff]   ;;  %v3523_v58 = vld [vmem:[#allocation8 + $0x90] ss:$8 sps:$4 sm:$0xff]  }
 0x26b   :  { %v937_v43 = vmax.f32 %v4660_v40, %v4661_v28  ;;  %v1102_v25 = vsel %vm1029_vm12, %v882_v12, %v1101_v21  ;;  %v4664_v32 = vrot.slane %v4663_v11, 2  ;;  %v999_v24 = vrot.slane %v4416_v42, 2  ;;  %1571 = vmatpush2.bf16.msra.mxu1 %v3511_v26  ;;  %v3519_v12 = vld [vmem:[#allocation8 + $0xb4] ss:$8 sps:$4 sm:$0xff]   ;;  %v3528_v21 = vld [vmem:[#allocation8 + $0x84] ss:$8 sps:$4 sm:$0xff]  }
 0x26c   :  { %v944_v9 = vmax.f32 %v4662_v61, %v943_v4  ;;  %v1096_v18 = vsel %vm1031_vm13, %v833_v15, %v1095_v20  ;;  %v1103_v49 = vsel %vm1031_vm13, %v889_v52, %v1102_v25  ;;  %v1122_v38 = vsel %vm1019_vm7, %v4666_v30, %v4665_v44  ;;  %v3525_v35 = vld [vmem:[#allocation8 + $0x94] ss:$8 sps:$4 sm:$0xff]   ;;  %v3526_v20 = vld [vmem:[#allocation8 + $0x80] ss:$8 sps:$4 sm:$0xff]  }
 0x26d   :  { %v938_v62 = vrot.slane %v937_v43, 1  ;;  %v993_v27 = vmax.f32 %v4663_v11, %v4664_v32  ;;  %v1129_v47 = vsel %vm1019_vm7, %v4668_v7, %v4667_v2  ;;  %v1140_v56 = vpack.c.bf16 %v1103_v49, %v1096_v18  ;;  %v3529_v40 = vld [vmem:[#allocation10 + $0xe0] ss:$16 sps:$4 sm:$0xff]   ;;  %v3531_v28 = vld [vmem:[#allocation10 + $0xe4] ss:$16 sps:$4 sm:$0xff]  }
 0x26e   :  { %v932_v10 = vmax.f32 %v4658_v19, %v931_v46  ;;  %v988_v55 = vmax.f32 %v986_v45, %v987_v14  ;;  %v945_v31 = vrot.slane %v944_v9, 1  ;;  %v1000_v41 = vmax.f32 %v4416_v42, %v999_v24  ;;  %v3516_v19 = vld [vmem:[#allocation8 + $0xc4] ss:$8 sps:$4 sm:$0xff]   ;;  %v3517_v46 = vld [vmem:[#allocation8 + $0xb0] ss:$8 sps:$4 sm:$0xff]   ;;  %2437 = vmatprep.subr.bf16.mxu0 %v3531_v28 }
 0x26f   :  { %v994_v6 = vrot.slane %v993_v27, 1  ;;  %v1123_v33 = vsel %vm1021_vm8, %v4669_v34, %v1122_v38  ;;  %v1130_v16 = vsel %vm1021_vm8, %v4670_v22, %v1129_v47  ;;  %1311 = vmatprep.mubr.bf16.mxu0 %v1140_v56  ;;  %v939_v54 = vmax.f32 %v937_v43, %v938_v62  ;;  %1572 = vmatprep.subr.bf16.mxu1 %v3516_v19  ;;  %v3534_v43 = vld [vmem:[#allocation10 + $0xc4] ss:$16 sps:$4 sm:$0xff]   ;;  %v3532_v4 = vld [vmem:[#allocation10 + $0xc0] ss:$16 sps:$4 sm:$0xff]  }
 0x270   :  { %v1124_v17 = vsel %vm1023_vm9, %v4671_v1, %v1123_v33  ;;  %v1131_v23 = vsel %vm1023_vm9, %v4672_v0, %v1130_v16  ;;  %1312 = vmatmul.mubr.bf16.gmra.mxu0 %v1139_v48  ;;  %v1001_v8 = vrot.slane %v1000_v41, 1  ;;  %v946_v57 = vmax.f32 %v944_v9, %v945_v31  ;;  %v3540_v61 = vld [vmem:[#allocation10 + $0x2e4] ss:$16 sps:$4 sm:$0xff]   ;;  %v3535_v52 = vld [vmem:[#allocation10 + $0xa0] ss:$16 sps:$4 sm:$0xff]  }
 0x271   :  { %v995_v45 = vmax.f32 %v993_v27, %v994_v6  ;;  %v1125_v42 = vsel %vm1025_vm10, %v4673_v63, %v1124_v17  ;;  %v1132_v39 = vsel %vm1025_vm10, %v4410_v13, %v1131_v23  ;;  %v3514_v13 = vld [vmem:[#allocation8 + $0xc0] ss:$8 sps:$4 sm:$0xff]   ;;  %2438 = vmatpush1.bf16.msra.mxu0 %v3529_v40  ;;  %v3537_v15 = vld [vmem:[#allocation10 + $0xa4] ss:$16 sps:$4 sm:$0xff]   ;;  %v1142_v22 = vld [vmem:[%s4609_s6] sm:$0x3] }
 0x272   :  { %v1126_v37 = vsel %vm1027_vm11, %v932_v10, %v1125_v42  ;;  %v1133_v53 = vsel %vm1027_vm11, %v988_v55, %v1132_v39  ;;  %v1002_v3 = vmax.f32 %v1000_v41, %v1001_v8  ;;  %1573 = vmatpush2.bf16.msra.mxu1 %v3514_v13  ;;  %2439 = vmatprep.subr.bf16.mxu0 %v3534_v43  ;;  %v3543_v25 = vld [vmem:[#allocation10 + $0x84] ss:$16 sps:$4 sm:$0xff]   ;;  %v3541_v14 = vld [vmem:[#allocation10 + $0x80] ss:$16 sps:$4 sm:$0xff]   ;;  %v4674_v17 = vld [vmem:[#allocation20_spill] sm:$0xff] }
 0x273   :  { %v1127_v29 = vsel %vm1029_vm12, %v939_v54, %v1126_v37  ;;  %v1134_v51 = vsel %vm1029_vm12, %v995_v45, %v1133_v53  ;;  %1574 = vmatprep.subr.bf16.mxu1 %v3519_v12  ;;  %v3549_v62 = vld [vmem:[#allocation10 + $0x64] ss:$16 sps:$4 sm:$0xff]   ;;  %v3547_v9 = vld [vmem:[#allocation10 + $0x60] ss:$16 sps:$4 sm:$0xff]   ;;  %v1331_v0 = vrot.slane %v1142_v22, %v4674_v17 }
 0x274   :  { %v1128_v48 = vsel %vm1031_vm13, %v946_v57, %v1127_v29  ;;  %v1135_v60 = vsel %vm1031_vm13, %v1002_v3, %v1134_v51  ;;  %v3555_v11 = vld [vmem:[#allocation10 + $0x44] ss:$16 sps:$4 sm:$0xff]   ;;  %v3553_v32 = vld [vmem:[#allocation10 + $0x40] ss:$16 sps:$4 sm:$0xff]  }
 0x275   :  { %v1141_v36 = vpack.c.bf16 %v1135_v60, %v1128_v48  ;;  %2440 = vmatpush1.bf16.msra.mxu0 %v3532_v4  ;;  %v3561_v27 = vld [vmem:[#allocation10 + $0x24] ss:$16 sps:$4 sm:$0xff]   ;;  %v3559_v24 = vld [vmem:[#allocation10 + $0x20] ss:$16 sps:$4 sm:$0xff]  }
 0x276   :  { %1575 = vmatpush2.bf16.msra.mxu1 %v3517_v46  ;;  %2441 = vmatprep.subr.bf16.mxu0 %v3537_v15  ;;  %v3567_v18 = vld [vmem:[#allocation10 + $0x4] ss:$16 sps:$4 sm:$0xff]   ;;  %v3565_v49 = vld [vmem:[#allocation10] ss:$16 sps:$4 sm:$0xff]  }
 0x277   :  { %1319 = vmatprep.mubr.bf16.mxu0 %v1141_v36  ;;  %1576 = vmatprep.subr.bf16.mxu1 %v3522_v50  ;;  %v3573_v44 = vld [vmem:[#allocation10 + $0x1e4] ss:$16 sps:$4 sm:$0xff]   ;;  %v3571_v30 = vld [vmem:[#allocation10 + $0x1e0] ss:$16 sps:$4 sm:$0xff]  }
 0x278   :  { %1320 = vmatmul.mubr.bf16.gmra.mxu0 %v1140_v56  ;;  %v3579_v38 = vld [vmem:[#allocation10 + $0x1c4] ss:$16 sps:$4 sm:$0xff]   ;;  %v3577_v2 = vld [vmem:[#allocation10 + $0x1c0] ss:$16 sps:$4 sm:$0xff]  }
 0x279   :  { %2442 = vmatpush1.bf16.msra.mxu0 %v3535_v52  ;;  %v3585_v7 = vld [vmem:[#allocation10 + $0x1a4] ss:$16 sps:$4 sm:$0xff]   ;;  %v3583_v47 = vld [vmem:[#allocation10 + $0x1a0] ss:$16 sps:$4 sm:$0xff]  }
 0x27a   :  { %1577 = vmatpush2.bf16.msra.mxu1 %v3520_v5  ;;  %2443 = vmatprep.subr.bf16.mxu0 %v3543_v25  ;;  %v3591_v56 = vld [vmem:[#allocation10 + $0x184] ss:$16 sps:$4 sm:$0xff]   ;;  %v3589_v10 = vld [vmem:[#allocation10 + $0x180] ss:$16 sps:$4 sm:$0xff]  }
 0x27b   :  { %1578 = vmatprep.subr.bf16.mxu1 %v3525_v35  ;;  %v3597_v55 = vld [vmem:[#allocation10 + $0x164] ss:$16 sps:$4 sm:$0xff]   ;;  %v3595_v6 = vld [vmem:[#allocation10 + $0x160] ss:$16 sps:$4 sm:$0xff]  }
 0x27c   :  { %v4675_v37 = vld [vmem:[#allocation21_spill] sm:$0xff] }
 0x27d   :  { %2444 = vmatpush1.bf16.msra.mxu0 %v3541_v14  ;;  %v1341_v53 = vrot.slane %v1142_v22, %v4675_v37  ;;  %v3538_v40 = vld [vmem:[#allocation10 + $0x2e0] ss:$16 sps:$4 sm:$0xff]   ;;  %v3546_v43 = vld [vmem:[#allocation10 + $0x2c4] ss:$16 sps:$4 sm:$0xff]  }
 0x27e   :  { %1579 = vmatpush2.bf16.msra.mxu1 %v3523_v58  ;;  %2445 = vmatprep.subr.bf16.mxu0 %v3549_v62  ;;  %v3544_v52 = vld [vmem:[#allocation10 + $0x2c0] ss:$16 sps:$4 sm:$0xff]   ;;  %v3552_v25 = vld [vmem:[#allocation10 + $0x2a4] ss:$16 sps:$4 sm:$0xff]  }
 0x27f   :  { %1580 = vmatprep.subr.bf16.mxu1 %v3528_v21  ;;  %v3606_v22 = vld [vmem:[#allocation10 + $0x384] ss:$16 sps:$4 sm:$0xff]  }
 0x281   :  { %2446 = vmatpush1.bf16.msra.mxu0 %v3547_v9 }
 0x282   :  { %1581 = vmatpush2.bf16.msra.mxu1 %v3526_v20  ;;  %2447 = vmatprep.subr.bf16.mxu0 %v3555_v11  ;;  %v3550_v11 = vld [vmem:[#allocation10 + $0x2a0] ss:$16 sps:$4 sm:$0xff]  }
 0x283   :  { %2480 = vmatprep.subr.bf16.mxu1 %v3540_v61 }
 0x285   :  { %2448 = vmatpush1.bf16.msra.mxu0 %v3553_v32  ;;  %v3558_v32 = vld [vmem:[#allocation10 + $0x284] ss:$16 sps:$4 sm:$0xff]  }
 0x286   :  { %2449 = vmatprep.subr.bf16.mxu0 %v3561_v27  ;;  %v3556_v27 = vld [vmem:[#allocation10 + $0x280] ss:$16 sps:$4 sm:$0xff]  }
 0x289   :  { %2450 = vmatpush1.bf16.msra.mxu0 %v3559_v24  ;;  %v3564_v24 = vld [vmem:[#allocation10 + $0x264] ss:$16 sps:$4 sm:$0xff]  }
 0x28a   :  { %2451 = vmatprep.subr.bf16.mxu0 %v3567_v18  ;;  %v3562_v18 = vld [vmem:[#allocation10 + $0x260] ss:$16 sps:$4 sm:$0xff]  }
 0x28d   :  { %2452 = vmatpush1.bf16.msra.mxu0 %v3565_v49  ;;  %v3570_v49 = vld [vmem:[#allocation10 + $0x244] ss:$16 sps:$4 sm:$0xff]  }
 0x28e   :  { %2453 = vmatprep.subr.bf16.mxu0 %v3573_v44  ;;  %v3568_v44 = vld [vmem:[#allocation10 + $0x240] ss:$16 sps:$4 sm:$0xff]  }
 0x291   :  { %2454 = vmatpush2.bf16.msra.mxu0 %v3571_v30  ;;  %v3576_v30 = vld [vmem:[#allocation10 + $0x224] ss:$16 sps:$4 sm:$0xff]  }
 0x292   :  { %2455 = vmatprep.subr.bf16.mxu0 %v3579_v38  ;;  %v3574_v38 = vld [vmem:[#allocation10 + $0x220] ss:$16 sps:$4 sm:$0xff]  }
 0x295   :  { %2456 = vmatpush2.bf16.msra.mxu0 %v3577_v2  ;;  %v3582_v2 = vld [vmem:[#allocation10 + $0x204] ss:$16 sps:$4 sm:$0xff]  }
 0x296   :  { %2457 = vmatprep.subr.bf16.mxu0 %v3585_v7  ;;  %v3580_v7 = vld [vmem:[#allocation10 + $0x200] ss:$16 sps:$4 sm:$0xff]  }
 0x299   :  { %2458 = vmatpush2.bf16.msra.mxu0 %v3583_v47  ;;  %v3588_v47 = vld [vmem:[#allocation10 + $0x3e4] ss:$16 sps:$4 sm:$0xff]  }
 0x29a   :  { %2459 = vmatprep.subr.bf16.mxu0 %v3591_v56  ;;  %v3586_v56 = vld [vmem:[#allocation10 + $0x3e0] ss:$16 sps:$4 sm:$0xff]  }
 0x29d   :  { %2460 = vmatpush2.bf16.msra.mxu0 %v3589_v10  ;;  %v3594_v10 = vld [vmem:[#allocation10 + $0x3c4] ss:$16 sps:$4 sm:$0xff]  }
 0x29e   :  { %2461 = vmatprep.subr.bf16.mxu0 %v3597_v55  ;;  %v3592_v55 = vld [vmem:[#allocation10 + $0x3c0] ss:$16 sps:$4 sm:$0xff]  }
 0x2a1   :  { %2462 = vmatpush2.bf16.msra.mxu0 %v3595_v6  ;;  %v3600_v6 = vld [vmem:[#allocation10 + $0x3a4] ss:$16 sps:$4 sm:$0xff]  }
 0x325   :  { %v3343_v31 = vpop.f32.mrf.mxu0 }
 0x327   :  { %v3344_v41 = vpop.f32.mrf.mxu0 }
 0x328   :  { %v3345_v1 = vadd.f32 %v3344_v41, %v3343_v31  ;;  %v3598_v31 = vld [vmem:[#allocation10 + $0x3a0] ss:$16 sps:$4 sm:$0xff]  }
 0x329   :  { %v3346_v34 = vpop.f32.mrf.mxu0  ;;  %v3601_v41 = vld [vmem:[#allocation10 + $0x140] ss:$16 sps:$4 sm:$0xff]  }
 0x32a   :  { %v1332_v39 = vmul.f32 %v3345_v1, %v1331_v0  ;;  %v3610_v1 = vld [vmem:[#allocation10 + $0x360] ss:$16 sps:$4 sm:$0xff]  }
 0x32b   :  { %v3347_v33 = vpop.f32.mrf.mxu0 }
 0x32c   :  { %v3348_v16 = vadd.f32 %v3347_v33, %v3346_v34  ;;  %v1342_v36 = vadd.f32 %v1341_v53, %v1332_v39  ;;  %v3603_v34 = vld [vmem:[#allocation10 + $0x144] ss:$16 sps:$4 sm:$0xff]   ;;  %v3604_v33 = vld [vmem:[#allocation10 + $0x380] ss:$16 sps:$4 sm:$0xff]  }
 0x32d   :  { %2463 = vmatprep.subr.bf16.mxu0 %v3603_v34  ;;  %v3621_v39 = vld [vmem:[#allocation10 + $0x324] ss:$16 sps:$4 sm:$0xff]  }
 0x32e   :  { %v1333_v8 = vmul.f32 %v3348_v16, %v1331_v0  ;;  %v1348_v58 = vmax.f32 %v1342_v36, 0.0  ;;  %2464 = vmatpush2.bf16.msra.mxu0 %v3601_v41  ;;  %v3607_v16 = vld [vmem:[#allocation10 + $0x120] ss:$16 sps:$4 sm:$0xff]   ;;  %v3628_v41 = vld [vmem:[#allocation10 + $0xc8] ss:$16 sps:$4 sm:$0xff]  }
 0x330   :  { %v3349_v54 = vpop.f32.mrf.mxu0  ;;  %v1343_v29 = vadd.f32 %v1341_v53, %v1333_v8  ;;  %v3616_v8 = vld [vmem:[#allocation10 + $0x340] ss:$16 sps:$4 sm:$0xff]  }
 0x332   :  { %v3350_v23 = vpop.f32.mrf.mxu0  ;;  %v1349_v19 = vmax.f32 %v1343_v29, 0.0  ;;  %v3636_v29 = vld [vmem:[#allocation10 + $0x2ec] ss:$16 sps:$4 sm:$0xff]  }
 0x333   :  { %v3351_v45 = vadd.f32 %v3350_v23, %v3349_v54  ;;  %v3609_v54 = vld [vmem:[#allocation10 + $0x124] ss:$16 sps:$4 sm:$0xff]   ;;  %v3613_v23 = vld [vmem:[#allocation10 + $0x100] ss:$16 sps:$4 sm:$0xff]  }
 0x334   :  { %v3352_v63 = vpop.f32.mrf.mxu0  ;;  %v1354_v28 = vpack.c.bf16 %v1349_v19, %v1348_v58  ;;  %2465 = vmatprep.subr.bf16.mxu0 %v3609_v54 }
 0x335   :  { %v1334_v42 = vmul.f32 %v3351_v45, %v1331_v0  ;;  %2466 = vmatpush2.bf16.msra.mxu0 %v3607_v16  ;;  %v3615_v45 = vld [vmem:[#allocation10 + $0x104] ss:$16 sps:$4 sm:$0xff]  }
 0x336   :  { %v3353_v57 = vpop.f32.mrf.mxu0  ;;  %2467 = vmatprep.subr.bf16.mxu0 %v3615_v45 }
 0x337   :  { %v3354_v3 = vadd.f32 %v3353_v57, %v3352_v63  ;;  %v1344_v48 = vadd.f32 %v1341_v53, %v1334_v42  ;;  %v3618_v63 = vld [vmem:[#allocation10 + $0x344] ss:$16 sps:$4 sm:$0xff]   ;;  %v3619_v42 = vld [vmem:[#allocation10 + $0x320] ss:$16 sps:$4 sm:$0xff]  }
 0x338   :  { %v3355_v51 = vpop.f32.mrf.mxu0  ;;  %v3627_v57 = vld [vmem:[#allocation10 + $0x304] ss:$16 sps:$4 sm:$0xff]  }
 0x339   :  { %v1335_v60 = vmul.f32 %v3354_v3, %v1331_v0  ;;  %v1350_v12 = vmax.f32 %v1344_v48, 0.0  ;;  %2468 = vmatpush2.bf16.msra.mxu0 %v3613_v23  ;;  %v3625_v3 = vld [vmem:[#allocation10 + $0x300] ss:$16 sps:$4 sm:$0xff]   ;;  %v3634_v23 = vld [vmem:[#allocation10 + $0x2e8] ss:$16 sps:$4 sm:$0xff]  }
 0x33a   :  { %v3356_v26 = vpop.f32.mrf.mxu0 }
 0x33b   :  { %v1345_v59 = vadd.f32 %v1341_v53, %v1335_v60  ;;  %v3357_v13 = vadd.f32 %v3356_v26, %v3355_v51  ;;  %v4676_v51 = vld [vmem:[#allocation19_spill] sm:$0xff]  ;;  %v1357_v60 = vld [vmem:[%s4611_s8] sm:$0xf] }
 0x33c   :  { %v3358_v46 = vpop.f32.mrf.mxu0  ;;  %v1610_v48 = vsub.s32 2, %v4676_v51  ;;  %v1636_v26 = vsub.s32 3, %v4676_v51 }
 0x33d   :  { %v1351_v5 = vmax.f32 %v1345_v59, 0.0  ;;  %v1336_v50 = vmul.f32 %v3357_v13, %v1331_v0  ;;  %v1607_v59 = vrot.slane %v1357_v60, %v4674_v17 }
 0x33e   :  { %v3359_v35 = vpop.f32.mrf.mxu0  ;;  %v1611_v36 = vrot.slane %v1357_v60, %v1610_v48  ;;  %v1637_v19 = vrot.slane %v1357_v60, %v1636_v26 }
 0x33f   :  { %v3360_v20 = vadd.f32 %v3359_v35, %v3358_v46  ;;  %v1355_v21 = vpack.c.bf16 %v1351_v5, %v1350_v12  ;;  %v1346_v61 = vadd.f32 %v1341_v53, %v1336_v50  ;;  %v1617_v12 = vrot.slane %v1607_v59, %v4674_v17  ;;  %v3649_v59 = vld [vmem:[#allocation10 + $0x48] ss:$16 sps:$4 sm:$0xff]  }
 0x340   :  { %v1621_v13 = vrot.slane %v1611_v36, %v4674_v17  ;;  %v1633_v5 = vrot.slane %v1357_v60, %v4675_v37  ;;  %v1647_v35 = vrot.slane %v1637_v19, %v4675_v37  ;;  %v3651_v60 = vld [vmem:[#allocation10 + $0x4c] ss:$16 sps:$4 sm:$0xff]  }
 0x341   :  { %v1337_v4 = vmul.f32 %v3360_v20, %v1331_v0  ;;  %1582 = vmatprep.mubr.bf16.mxu1 %v1355_v21  ;;  %v1352_v14 = vmax.f32 %v1346_v61, 0.0  ;;  %v3612_v0 = vld [vmem:[#allocation10 + $0x364] ss:$16 sps:$4 sm:$0xff]   ;;  %v3654_v36 = vld [vmem:[#allocation10 + $0x28c] ss:$16 sps:$4 sm:$0xff]  }
 0x342   :  { %1583 = vmatmul.mubr.bf16.vlgmr.msra.gmra.mxu1 %v1354_v28  ;;  %v3657_v19 = vld [vmem:[#allocation10 + $0x2c] ss:$16 sps:$4 sm:$0xff]  }
 0x343   :  { %v1347_v15 = vadd.f32 %v1341_v53, %v1337_v4  ;;  %2481 = vmatpush1.bf16.msra.mxu1 %v3538_v40  ;;  %v3624_v53 = vld [vmem:[#allocation10 + $0xec] ss:$16 sps:$4 sm:$0xff]  }
 0x344   :  { %2482 = vmatprep.subr.bf16.mxu1 %v3546_v43  ;;  %2523 = vmatprep.subr.bf16.mxu0 %v3624_v53  ;;  %v3645_v53 = vld [vmem:[#allocation10 + $0x6c] ss:$16 sps:$4 sm:$0xff]  }
 0x345   :  { %v1353_v62 = vmax.f32 %v1347_v15, 0.0 }
 0x347   :  { %v1356_v9 = vpack.c.bf16 %v1353_v62, %v1352_v14  ;;  %2483 = vmatpush1.bf16.msra.mxu1 %v3544_v52 }
 0x348   :  { %2484 = vmatprep.subr.bf16.mxu1 %v3552_v25 }
 0x349   :  { %1592 = vmatprep.mubr.bf16.mxu1 %v1356_v9 }
 0x34a   :  { %1593 = vmatmul.mubr.bf16.gmra.mxu1 %v1355_v21  ;;  %v1643_v21 = vrot.slane %v1633_v5, %v4675_v37  ;;  %v3658_v5 = vld [vmem:[#allocation10 + $0x268] ss:$16 sps:$4 sm:$0xff]  }
 0x34b   :  { %2485 = vmatpush1.bf16.msra.mxu1 %v3550_v11 }
 0x34c   :  { %2486 = vmatprep.subr.bf16.mxu1 %v3558_v32 }
 0x34f   :  { %2487 = vmatpush1.bf16.msra.mxu1 %v3556_v27 }
 0x350   :  { %2488 = vmatprep.subr.bf16.mxu1 %v3564_v24 }
 0x353   :  { %2489 = vmatpush1.bf16.msra.mxu1 %v3562_v18 }
 0x354   :  { %2490 = vmatprep.subr.bf16.mxu1 %v3570_v49 }
 0x357   :  { %2491 = vmatpush1.bf16.msra.mxu1 %v3568_v44 }
 0x358   :  { %2492 = vmatprep.subr.bf16.mxu1 %v3576_v30 }
 0x35b   :  { %2493 = vmatpush1.bf16.msra.mxu1 %v3574_v38  ;;  %v3622_v38 = vld [vmem:[#allocation10 + $0xe8] ss:$16 sps:$4 sm:$0xff]  }
 0x35c   :  { %2494 = vmatprep.subr.bf16.mxu1 %v3582_v2 }
 0x35f   :  { %2495 = vmatpush1.bf16.msra.mxu1 %v3580_v7 }
 0x360   :  { %2496 = vmatprep.subr.bf16.mxu1 %v3588_v47  ;;  %v3630_v47 = vld [vmem:[#allocation10 + $0xcc] ss:$16 sps:$4 sm:$0xff]  }
 0x363   :  { %2497 = vmatpush2.bf16.msra.mxu1 %v3586_v56 }
 0x364   :  { %2498 = vmatprep.subr.bf16.mxu1 %v3594_v10 }
 0x367   :  { %2499 = vmatpush2.bf16.msra.mxu1 %v3592_v55 }
 0x368   :  { %2500 = vmatprep.subr.bf16.mxu1 %v3600_v6 }
 0x36b   :  { %2501 = vmatpush2.bf16.msra.mxu1 %v3598_v31 }
 0x36c   :  { %2502 = vmatprep.subr.bf16.mxu1 %v3606_v22 }
 0x36f   :  { %2503 = vmatpush2.bf16.msra.mxu1 %v3604_v33  ;;  %v3633_v33 = vld [vmem:[#allocation10 + $0xac] ss:$16 sps:$4 sm:$0xff]  }
 0x370   :  { %2504 = vmatprep.subr.bf16.mxu1 %v3612_v0  ;;  %v3631_v0 = vld [vmem:[#allocation10 + $0xa8] ss:$16 sps:$4 sm:$0xff]  }
 0x373   :  { %2505 = vmatpush2.bf16.msra.mxu1 %v3610_v1 }
 0x374   :  { %2506 = vmatprep.subr.bf16.mxu1 %v3618_v63  ;;  %v3642_v63 = vld [vmem:[#allocation10 + $0x2cc] ss:$16 sps:$4 sm:$0xff]  }
 0x377   :  { %2507 = vmatpush2.bf16.msra.mxu1 %v3616_v8  ;;  %v3639_v8 = vld [vmem:[#allocation10 + $0x8c] ss:$16 sps:$4 sm:$0xff]  }
 0x378   :  { %2508 = vmatprep.subr.bf16.mxu1 %v3621_v39  ;;  %v3640_v39 = vld [vmem:[#allocation10 + $0x2c8] ss:$16 sps:$4 sm:$0xff]  }
 0x37b   :  { %2509 = vmatpush2.bf16.msra.mxu1 %v3619_v42  ;;  %v3637_v42 = vld [vmem:[#allocation10 + $0x88] ss:$16 sps:$4 sm:$0xff]  }
 0x37c   :  { %2510 = vmatprep.subr.bf16.mxu1 %v3627_v57  ;;  %v3648_v57 = vld [vmem:[#allocation10 + $0x2ac] ss:$16 sps:$4 sm:$0xff]  }
 0x37f   :  { %2511 = vmatpush2.bf16.msra.mxu1 %v3625_v3  ;;  %v3643_v3 = vld [vmem:[#allocation10 + $0x68] ss:$16 sps:$4 sm:$0xff]  }
 0x380   :  { %2566 = vmatprep.subr.bf16.mxu1 %v3636_v29  ;;  %v3646_v29 = vld [vmem:[#allocation10 + $0x2a8] ss:$16 sps:$4 sm:$0xff]  }
 0x402   :  { %v1584_v46 = vpop.f32.mrf.mxu1 }
 0x403   :  { %v1622_v20 = vmul.f32 %v1617_v12, %v1584_v46  ;;  %v3660_v46 = vld [vmem:[#allocation10 + $0x26c] ss:$16 sps:$4 sm:$0xff]  }
 0x404   :  { %v1586_v50 = vpop.f32.mrf.mxu1 }
 0x405   :  { %v1623_v58 = vmul.f32 %v1621_v13, %v1586_v50  ;;  %v1648_v52 = vadd.f32 %v1643_v21, %v1622_v20  ;;  %v3663_v50 = vld [vmem:[#allocation10 + $0xc] ss:$16 sps:$4 sm:$0xff]   ;;  %v3664_v20 = vld [vmem:[#allocation10 + $0x248] ss:$16 sps:$4 sm:$0xff]  }
 0x406   :  { %v1588_v40 = vpop.f32.mrf.mxu1 }
 0x407   :  { %v1624_v28 = vmul.f32 %v1617_v12, %v1588_v40  ;;  %v1649_v61 = vadd.f32 %v1647_v35, %v1623_v58  ;;  %v1656_v24 = vmax.f32 %v1648_v52, 0.0  ;;  %v3666_v58 = vld [vmem:[#allocation10 + $0x24c] ss:$16 sps:$4 sm:$0xff]   ;;  %v3676_v52 = vld [vmem:[#allocation10 + $0x208] ss:$16 sps:$4 sm:$0xff]  }
 0x408   :  { %v1590_v43 = vpop.f32.mrf.mxu1  ;;  %v3672_v40 = vld [vmem:[#allocation10 + $0x22c] ss:$16 sps:$4 sm:$0xff]  }
 0x409   :  { %v1650_v4 = vadd.f32 %v1643_v21, %v1624_v28  ;;  %v1625_v15 = vmul.f32 %v1621_v13, %v1590_v43  ;;  %v1657_v11 = vmax.f32 %v1649_v61, 0.0  ;;  %v3667_v28 = vld [vmem:[#allocation10 + $0x1e8] ss:$16 sps:$4 sm:$0xff]   ;;  %v3675_v61 = vld [vmem:[#allocation10 + $0x1cc] ss:$16 sps:$4 sm:$0xff]  }
 0x40a   :  { %v1594_v25 = vpop.f32.mrf.mxu1  ;;  %v3670_v43 = vld [vmem:[#allocation10 + $0x228] ss:$16 sps:$4 sm:$0xff]  }
 0x40b   :  { %v1651_v14 = vadd.f32 %v1647_v35, %v1625_v15  ;;  %v1658_v62 = vmax.f32 %v1650_v4, 0.0  ;;  %v1626_v18 = vmul.f32 %v1617_v12, %v1594_v25  ;;  %v3678_v4 = vld [vmem:[#allocation10 + $0x20c] ss:$16 sps:$4 sm:$0xff]   ;;  %v3673_v15 = vld [vmem:[#allocation10 + $0x1c8] ss:$16 sps:$4 sm:$0xff]  }
 0x40c   :  { %v1596_v9 = vpop.f32.mrf.mxu1  ;;  %v3681_v25 = vld [vmem:[#allocation10 + $0x1ac] ss:$16 sps:$4 sm:$0xff]  }
 0x40d   :  { %v1659_v32 = vmax.f32 %v1651_v14, 0.0  ;;  %v1627_v27 = vmul.f32 %v1621_v13, %v1596_v9  ;;  %v4555_v2 = vpack.c.bf16 %v1658_v62, %v1656_v24  ;;  %v1652_v6 = vadd.f32 %v1643_v21, %v1626_v18  ;;  %v3684_v14 = vld [vmem:[#allocation10 + $0x3ec] ss:$16 sps:$4 sm:$0xff]   ;;  %v3679_v62 = vld [vmem:[#allocation10 + $0x1a8] ss:$16 sps:$4 sm:$0xff]  }
 0x40e   :  { %v1598_v49 = vpop.f32.mrf.mxu1  ;;  %v3682_v9 = vld [vmem:[#allocation10 + $0x3e8] ss:$16 sps:$4 sm:$0xff]   ;;  %v3693_v18 = vld [vmem:[#allocation10 + $0x16c] ss:$16 sps:$4 sm:$0xff]  }
 0x40f   :  { %v1628_v44 = vmul.f32 %v1617_v12, %v1598_v49  ;;  %v1665_v30 = vpack.c.bf16 %v1659_v32, %v1657_v11  ;;  %v1653_v56 = vadd.f32 %v1647_v35, %v1627_v27  ;;  %v1660_v54 = vmax.f32 %v1652_v6, 0.0  ;;  %v3655_v12 = vld [vmem:[#allocation10 + $0x28] ss:$16 sps:$4 sm:$0xff]   ;;  %v3687_v11 = vld [vmem:[#allocation10 + $0x18c] ss:$16 sps:$4 sm:$0xff]  }
 0x410   :  { %v1600_v7 = vpop.f32.mrf.mxu1  ;;  %v3690_v32 = vld [vmem:[#allocation10 + $0x3cc] ss:$16 sps:$4 sm:$0xff]   ;;  %v3685_v27 = vld [vmem:[#allocation10 + $0x188] ss:$16 sps:$4 sm:$0xff]  }
 0x411   :  { %v1654_v10 = vadd.f32 %v1643_v21, %v1628_v44  ;;  %v1629_v55 = vmul.f32 %v1621_v13, %v1600_v7  ;;  %2469 = vmatprep.mubr.bf16.mxu0 %v1665_v30  ;;  %v1661_v22 = vmax.f32 %v1653_v56, 0.0  ;;  %v3652_v13 = vld [vmem:[#allocation10 + $0x288] ss:$16 sps:$4 sm:$0xff]   ;;  %v3669_v21 = vld [vmem:[#allocation10 + $0x1ec] ss:$16 sps:$4 sm:$0xff]  }
 0x412   :  { %2470 = vmatmul.mubr.bf16.vlgmr.msra.gmra.mxu0 %v4555_v2  ;;  %v3688_v24 = vld [vmem:[#allocation10 + $0x3c8] ss:$16 sps:$4 sm:$0xff]   ;;  %v3696_v49 = vld [vmem:[#allocation10 + $0x3ac] ss:$16 sps:$4 sm:$0xff]  }
 0x413   :  { %v1655_v31 = vadd.f32 %v1647_v35, %v1629_v55  ;;  %2524 = vmatpush1.bf16.msra.mxu0 %v3622_v38  ;;  %2555 = vmatprep.mubr.bf16.mxu0 %v1665_v30  ;;  %v1662_v34 = vmax.f32 %v1654_v10, 0.0  ;;  %v3661_v35 = vld [vmem:[#allocation10 + $0x8] ss:$16 sps:$4 sm:$0xff]   ;;  %v3699_v38 = vld [vmem:[#allocation10 + $0x14c] ss:$16 sps:$4 sm:$0xff]  }
 0x414   :  { %2525 = vmatprep.subr.bf16.mxu0 %v3630_v47  ;;  %v3691_v44 = vld [vmem:[#allocation10 + $0x168] ss:$16 sps:$4 sm:$0xff]   ;;  %v3702_v7 = vld [vmem:[#allocation10 + $0x38c] ss:$16 sps:$4 sm:$0xff]  }
 0x415   :  { %v1663_v16 = vmax.f32 %v1655_v31, 0.0  ;;  %v4558_v45 = vpack.c.bf16 %v1662_v34, %v1660_v54  ;;  %v3694_v30 = vld [vmem:[#allocation10 + $0x3a8] ss:$16 sps:$4 sm:$0xff]   ;;  %v3705_v10 = vld [vmem:[#allocation10 + $0x12c] ss:$16 sps:$4 sm:$0xff]  }
 0x416   :  { %v3697_v47 = vld [vmem:[#allocation10 + $0x148] ss:$16 sps:$4 sm:$0xff]   ;;  %v3708_v55 = vld [vmem:[#allocation10 + $0x36c] ss:$16 sps:$4 sm:$0xff]  }
 0x417   :  { %2526 = vmatpush1.bf16.msra.mxu0 %v3628_v41  ;;  %v1667_v1 = vpack.c.bf16 %v1663_v16, %v1661_v22  ;;  %v3700_v56 = vld [vmem:[#allocation10 + $0x388] ss:$16 sps:$4 sm:$0xff]   ;;  %v3711_v41 = vld [vmem:[#allocation10 + $0x10c] ss:$16 sps:$4 sm:$0xff]  }
 0x418   :  { %2527 = vmatprep.subr.bf16.mxu0 %v3633_v33  ;;  %v3703_v6 = vld [vmem:[#allocation10 + $0x128] ss:$16 sps:$4 sm:$0xff]   ;;  %v3714_v34 = vld [vmem:[#allocation10 + $0x34c] ss:$16 sps:$4 sm:$0xff]  }
 0x419   :  { %2512 = vmatprep.mubr.bf16.mxu1 %v1667_v1  ;;  %v3706_v31 = vld [vmem:[#allocation10 + $0x368] ss:$16 sps:$4 sm:$0xff]   ;;  %v3717_v16 = vld [vmem:[#allocation10 + $0x32c] ss:$16 sps:$4 sm:$0xff]  }
 0x41a   :  { %2513 = vmatmul.mubr.bf16.vlgmr.msra.gmra.mxu1 %v4558_v45  ;;  %v3709_v33 = vld [vmem:[#allocation10 + $0x108] ss:$16 sps:$4 sm:$0xff]  }
 0x41b   :  { %2528 = vmatpush1.bf16.msra.mxu0 %v3631_v0  ;;  %2567 = vmatpush1.bf16.msra.mxu1 %v3634_v23  ;;  %v3712_v22 = vld [vmem:[#allocation10 + $0x348] ss:$16 sps:$4 sm:$0xff]   ;;  %v3720_v23 = vld [vmem:[#allocation10 + $0x30c] ss:$16 sps:$4 sm:$0xff]  }
 0x41c   :  { %2598 = vmatprep.mubr.bf16.mxu1 %v1667_v1  ;;  %2529 = vmatprep.subr.bf16.mxu0 %v3639_v8  ;;  %v3721_v54 = vld [vmem:[#allocation11 + $0x78] sm:$0xff]   ;;  %v3723_v8 = vld [vmem:[#allocation11 + $0x70] sm:$0xff]  }
 0x41d   :  { %2568 = vmatprep.subr.bf16.mxu1 %v3642_v63  ;;  %v3715_v1 = vld [vmem:[#allocation10 + $0x328] ss:$16 sps:$4 sm:$0xff]  }
 0x41e   :  { %v3722_v0 = vld [vmem:[#allocation11 + $0x38] sm:$0xff]  }
 0x41f   :  { %2530 = vmatpush1.bf16.msra.mxu0 %v3637_v42  ;;  %2569 = vmatpush1.bf16.msra.mxu1 %v3640_v39  ;;  %v3718_v63 = vld [vmem:[#allocation10 + $0x308] ss:$16 sps:$4 sm:$0xff]   ;;  %v3724_v42 = vld [vmem:[#allocation11 + $0x30] sm:$0xff]  }
 0x420   :  { %2531 = vmatprep.subr.bf16.mxu0 %v3645_v53  ;;  %2570 = vmatprep.subr.bf16.mxu1 %v3648_v57  ;;  %v3725_v39 = vld [vmem:[#allocation11 + $0x68] sm:$0xff]   ;;  %v3727_v57 = vld [vmem:[#allocation11 + $0x60] sm:$0xff]  }
 0x421   :  { %v3726_v53 = vld [vmem:[#allocation11 + $0x28] sm:$0xff]  }
 0x423   :  { %2532 = vmatpush1.bf16.msra.mxu0 %v3643_v3  ;;  %2571 = vmatpush1.bf16.msra.mxu1 %v3646_v29  ;;  %v3728_v3 = vld [vmem:[#allocation11 + $0x20] sm:$0xff]   ;;  %v3729_v29 = vld [vmem:[#allocation11 + $0x58] sm:$0xff]  }
 0x424   :  { %2533 = vmatprep.subr.bf16.mxu0 %v3651_v60  ;;  %2572 = vmatprep.subr.bf16.mxu1 %v3654_v36  ;;  %v3731_v60 = vld [vmem:[#allocation11 + $0x50] sm:$0xff]  }
 0x425   :  { %v3732_v36 = vld [vmem:[#allocation11 + $0x10] sm:$0xff]  }
 0x427   :  { %2534 = vmatpush1.bf16.msra.mxu0 %v3649_v59  ;;  %2573 = vmatpush1.bf16.msra.mxu1 %v3652_v13  ;;  %v3733_v59 = vld [vmem:[#allocation11 + $0x48] sm:$0xff]  }
 0x428   :  { %2535 = vmatprep.subr.bf16.mxu0 %v3657_v19  ;;  %2574 = vmatprep.subr.bf16.mxu1 %v3660_v46  ;;  %v3734_v13 = vld [vmem:[#allocation11 + $0x8] sm:$0xff]   ;;  %v3735_v19 = vld [vmem:[#allocation11 + $0x40] sm:$0xff]  }
 0x429   :  { %v3736_v46 = vld [vmem:[#allocation11] sm:$0xff]  }
 0x42b   :  { %2536 = vmatpush1.bf16.msra.mxu0 %v3655_v12  ;;  %2575 = vmatpush1.bf16.msra.mxu1 %v3658_v5  ;;  %v4566_v5 = vld [vmem:[%s4613_s10] sm:$0xff] }
 0x42c   :  { %2537 = vmatprep.subr.bf16.mxu0 %v3663_v50  ;;  %2576 = vmatprep.subr.bf16.mxu1 %v3666_v58  ;;  %v2617_v50 = vrot.slane %v4566_v5, %v1610_v48 }
 0x42f   :  { %2538 = vmatpush1.bf16.msra.mxu0 %v3661_v35  ;;  %2577 = vmatpush1.bf16.msra.mxu1 %v3664_v20  ;;  %v2613_v35 = vrot.slane %v4566_v5, %v4674_v17 }
 0x430   :  { %2539 = vmatprep.subr.bf16.mxu0 %v3669_v21  ;;  %2578 = vmatprep.subr.bf16.mxu1 %v3672_v40  ;;  %v2637_v21 = vrot.slane %v2617_v50, %v4674_v17  ;;  %v2661_v40 = vrot.slane %v4566_v5, %v1636_v26 }
 0x433   :  { %2540 = vmatpush2.bf16.msra.mxu0 %v3667_v28  ;;  %2579 = vmatpush1.bf16.msra.mxu1 %v3670_v43 }
 0x434   :  { %2541 = vmatprep.subr.bf16.mxu0 %v3675_v61  ;;  %2580 = vmatprep.subr.bf16.mxu1 %v3678_v4  ;;  %v2633_v61 = vrot.slane %v2613_v35, %v4674_v17  ;;  %v2657_v4 = vrot.slane %v4566_v5, %v4675_v37 }
 0x437   :  { %2542 = vmatpush2.bf16.msra.mxu0 %v3673_v15  ;;  %2581 = vmatpush1.bf16.msra.mxu1 %v3676_v52 }
 0x438   :  { %2543 = vmatprep.subr.bf16.mxu0 %v3681_v25  ;;  %2582 = vmatprep.subr.bf16.mxu1 %v3684_v14  ;;  %v2681_v14 = vrot.slane %v2661_v40, %v4675_v37 }
 0x43b   :  { %2544 = vmatpush2.bf16.msra.mxu0 %v3679_v62  ;;  %2583 = vmatpush2.bf16.msra.mxu1 %v3682_v9 }
 0x43c   :  { %2545 = vmatprep.subr.bf16.mxu0 %v3687_v11  ;;  %2584 = vmatprep.subr.bf16.mxu1 %v3690_v32  ;;  %v2677_v32 = vrot.slane %v2657_v4, %v4675_v37 }
 0x43f   :  { %2546 = vmatpush2.bf16.msra.mxu0 %v3685_v27  ;;  %2585 = vmatpush2.bf16.msra.mxu1 %v3688_v24 }
 0x440   :  { %2547 = vmatprep.subr.bf16.mxu0 %v3693_v18  ;;  %2586 = vmatprep.subr.bf16.mxu1 %v3696_v49 }
 0x443   :  { %2548 = vmatpush2.bf16.msra.mxu0 %v3691_v44  ;;  %2587 = vmatpush2.bf16.msra.mxu1 %v3694_v30 }
 0x444   :  { %2549 = vmatprep.subr.bf16.mxu0 %v3699_v38  ;;  %2588 = vmatprep.subr.bf16.mxu1 %v3702_v7 }
 0x447   :  { %2550 = vmatpush2.bf16.msra.mxu0 %v3697_v47  ;;  %2589 = vmatpush2.bf16.msra.mxu1 %v3700_v56 }
 0x448   :  { %2551 = vmatprep.subr.bf16.mxu0 %v3705_v10  ;;  %2590 = vmatprep.subr.bf16.mxu1 %v3708_v55 }
 0x44b   :  { %2552 = vmatpush2.bf16.msra.mxu0 %v3703_v6  ;;  %2591 = vmatpush2.bf16.msra.mxu1 %v3706_v31  ;;  %v3738_v6 = vld [vmem:[#allocation11 + $0xb8] sm:$0xff]  }
 0x44c   :  { %2553 = vmatprep.subr.bf16.mxu0 %v3711_v41  ;;  %2592 = vmatprep.subr.bf16.mxu1 %v3714_v34  ;;  %v3739_v41 = vld [vmem:[#allocation11 + $0xf0] sm:$0xff]  }
 0x44d   :  { %v3740_v34 = vld [vmem:[#allocation11 + $0xb0] sm:$0xff]  }
 0x44f   :  { %2554 = vmatpush2.bf16.msra.mxu0 %v3709_v33  ;;  %2593 = vmatpush2.bf16.msra.mxu1 %v3712_v22  ;;  %v3741_v33 = vld [vmem:[#allocation11 + $0xe8] sm:$0xff]  }
 0x450   :  { %2594 = vmatprep.subr.bf16.mxu1 %v3717_v16  ;;  %3361 = vmatprep.subr.bf16.mxu0 %v3721_v54  ;;  %v3742_v22 = vld [vmem:[#allocation11 + $0xa8] sm:$0xff]   ;;  %v3743_v16 = vld [vmem:[#allocation11 + $0xe0] sm:$0xff]  }
 0x451   :  { %v3744_v54 = vld [vmem:[#allocation11 + $0xa0] sm:$0xff]  }
 0x452   :  { %2556 = vmatmul.mubr.bf16.vlgmr.msra.gmra.mxu0 %v4555_v2  ;;  %v3730_v2 = vld [vmem:[#allocation11 + $0x18] sm:$0xff]  }
 0x453   :  { %2595 = vmatpush2.bf16.msra.mxu1 %v3715_v1  ;;  %3362 = vmatpush3.bf16.msra.mxu0 %v3722_v0  ;;  %v3745_v1 = vld [vmem:[#allocation11 + $0xd8] sm:$0xff]  }
 0x454   :  { %2596 = vmatprep.subr.bf16.mxu1 %v3720_v23  ;;  %3363 = vmatprep.subr.bf16.mxu0 %v3723_v8  ;;  %v3746_v0 = vld [vmem:[#allocation11 + $0x98] sm:$0xff]   ;;  %v3747_v23 = vld [vmem:[#allocation11 + $0xd0] sm:$0xff]  }
 0x455   :  { %v3748_v8 = vld [vmem:[#allocation11 + $0x90] sm:$0xff]  }
 0x457   :  { %2597 = vmatpush2.bf16.msra.mxu1 %v3718_v63  ;;  %3364 = vmatpush3.bf16.msra.mxu0 %v3724_v42  ;;  %v3749_v63 = vld [vmem:[#allocation11 + $0xc8] sm:$0xff]  }
 0x458   :  { %3365 = vmatprep.subr.bf16.mxu0 %v3725_v39  ;;  %v3750_v42 = vld [vmem:[#allocation11 + $0x88] sm:$0xff]   ;;  %v3751_v39 = vld [vmem:[#allocation11 + $0xc0] sm:$0xff]  }
 0x45a   :  { %2599 = vmatmul.mubr.bf16.vlgmr.msra.gmra.mxu1 %v4558_v45  ;;  %v3737_v45 = vld [vmem:[#allocation11 + $0xf8] sm:$0xff]  }
 0x45b   :  { %3366 = vmatpush3.bf16.msra.mxu0 %v3726_v53  ;;  %v3752_v53 = vld [vmem:[#allocation11 + $0x80] sm:$0xff]  }
 0x45c   :  { %3367 = vmatprep.subr.bf16.mxu0 %v3727_v57  ;;  %v2624_v57 = vsub.s32 6, %v4676_v51 }
 0x45f   :  { %3368 = vmatpush3.bf16.msra.mxu0 %v3728_v3 }
 0x460   :  { %3369 = vmatprep.subr.bf16.mxu0 %v3729_v29  ;;  %v2620_v29 = vsub.s32 4, %v4676_v51 }
 0x463   :  { %3370 = vmatpush3.bf16.msra.mxu0 %v3730_v2  ;;  %v2625_v2 = vrot.slane %v4566_v5, %v2624_v57 }
 0x464   :  { %3371 = vmatprep.subr.bf16.mxu0 %v3731_v60  ;;  %v2668_v60 = vsub.s32 7, %v4676_v51 }
 0x467   :  { %3372 = vmatpush3.bf16.msra.mxu0 %v3732_v36 }
 0x468   :  { %3373 = vmatprep.subr.bf16.mxu0 %v3733_v59  ;;  %v2621_v59 = vrot.slane %v4566_v5, %v2620_v29 }
 0x46b   :  { %3374 = vmatpush3.bf16.msra.mxu0 %v3734_v13  ;;  %v2664_v13 = vsub.s32 5, %v4676_v51 }
 0x46c   :  { %3375 = vmatprep.subr.bf16.mxu0 %v3735_v19 }
 0x46d   :  { %v2665_v35 = vrot.slane %v4566_v5, %v2664_v13 }
 0x46f   :  { %3376 = vmatpush3.bf16.msra.mxu0 %v3736_v46  ;;  %v2645_v46 = vrot.slane %v2625_v2, %v4674_v17 }
 0x470   :  { %3383 = vmatprep.subr.bf16.mxu0 %v3737_v45  ;;  %v2669_v45 = vrot.slane %v4566_v5, %v2668_v60 }
 0x4d2   :  { %v2471_v12 = vpop.f32.mrf.mxu0 }
 0x4d4   :  { %v2473_v58 = vpop.f32.mrf.mxu0 }
 0x4d6   :  { %v2475_v28 = vpop.f32.mrf.mxu0 }
 0x4d8   :  { %v2477_v9 = vpop.f32.mrf.mxu0 }
 0x4da   :  { %v2514_v20 = vpop.f32.mrf.mxu1 }
 0x4db   :  { %v2515_v43 = vadd.f32 %v2514_v20, %v2471_v12 }
 0x4dc   :  { %v2516_v15 = vpop.f32.mrf.mxu1 }
 0x4dd   :  { %v2517_v48 = vadd.f32 %v2516_v15, %v2473_v58  ;;  %v2646_v11 = vmul.f32 %v2633_v61, %v2515_v43  ;;  %v2641_v58 = vrot.slane %v2621_v59, %v4674_v17  ;;  %v2689_v43 = vrot.slane %v2669_v45, %v4675_v37 }
 0x4de   :  { %v2518_v52 = vpop.f32.mrf.mxu1  ;;  %v2685_v15 = vrot.slane %v2665_v35, %v4675_v37 }
 0x4df   :  { %v2647_v25 = vmul.f32 %v2637_v21, %v2517_v48  ;;  %v2519_v62 = vadd.f32 %v2518_v52, %v2475_v28  ;;  %v2690_v30 = vadd.f32 %v2677_v32, %v2646_v11 }
 0x4e0   :  { %v2520_v27 = vpop.f32.mrf.mxu1 }
 0x4e1   :  { %v2650_v26 = vmul.f32 %v2633_v61, %v2519_v62  ;;  %v2521_v24 = vadd.f32 %v2520_v27, %v2477_v9  ;;  %v2691_v18 = vadd.f32 %v2681_v14, %v2647_v25  ;;  %v2698_v10 = vmax.f32 %v2690_v30, 0.0 }
 0x4e3   :  { %v2694_v49 = vadd.f32 %v2677_v32, %v2650_v26  ;;  %v2651_v44 = vmul.f32 %v2637_v21, %v2521_v24  ;;  %v2699_v47 = vmax.f32 %v2691_v18, 0.0 }
 0x4e5   :  { %v2695_v38 = vadd.f32 %v2681_v14, %v2651_v44  ;;  %v2702_v7 = vmax.f32 %v2694_v49, 0.0 }
 0x4e7   :  { %v2703_v56 = vmax.f32 %v2695_v38, 0.0  ;;  %v2706_v31 = vpack.c.bf16 %v2702_v7, %v2698_v10  ;;  %v3273_v7 = vld [vmem:[%s4615_s12] ss:$0 sm:$0xff] }
 0x4e9   :  { %v2707_v55 = vpack.c.bf16 %v2703_v56, %v2699_v47 }
 0x4eb   :  { %3005 = vmatprep.mubr.bf16.mxu0 %v2707_v55 }
 0x4ec   :  { %3006 = vmatmul.mubr.bf16.vlgmr.msra.gmra.mxu0 %v2706_v31 }
 0x4ed   :  { %3384 = vmatpush3.bf16.msra.mxu0 %v3738_v6 }
 0x4ee   :  { %3385 = vmatprep.subr.bf16.mxu0 %v3739_v41 }
 0x4f1   :  { %3386 = vmatpush3.bf16.msra.mxu0 %v3740_v34 }
 0x4f2   :  { %3387 = vmatprep.subr.bf16.mxu0 %v3741_v33 }
 0x4f5   :  { %3388 = vmatpush3.bf16.msra.mxu0 %v3742_v22 }
 0x4f6   :  { %3389 = vmatprep.subr.bf16.mxu0 %v3743_v16 }
 0x4f9   :  { %3390 = vmatpush3.bf16.msra.mxu0 %v3744_v54 }
 0x4fa   :  { %3391 = vmatprep.subr.bf16.mxu0 %v3745_v1 }
 0x4fd   :  { %3392 = vmatpush3.bf16.msra.mxu0 %v3746_v0 }
 0x4fe   :  { %3393 = vmatprep.subr.bf16.mxu0 %v3747_v23 }
 0x501   :  { %3394 = vmatpush3.bf16.msra.mxu0 %v3748_v8 }
 0x502   :  { %3395 = vmatprep.subr.bf16.mxu0 %v3749_v63 }
 0x505   :  { %3396 = vmatpush3.bf16.msra.mxu0 %v3750_v42 }
 0x506   :  { %3397 = vmatprep.subr.bf16.mxu0 %v3751_v39 }
 0x509   :  { %3398 = vmatpush3.bf16.msra.mxu0 %v3752_v53 }
 0x512   :  { %v2557_v3 = vpop.f32.mrf.mxu0 }
 0x514   :  { %v2559_v36 = vpop.f32.mrf.mxu0 }
 0x516   :  { %v2561_v12 = vpop.f32.mrf.mxu0 }
 0x518   :  { %v2563_v4 = vpop.f32.mrf.mxu0 }
 0x51a   :  { %v2600_v19 = vpop.f32.mrf.mxu1 }
 0x51b   :  { %v2601_v50 = vadd.f32 %v2600_v19, %v2557_v3 }
 0x51c   :  { %v2602_v20 = vpop.f32.mrf.mxu1 }
 0x51d   :  { %v2603_v21 = vadd.f32 %v2602_v20, %v2559_v36  ;;  %v2648_v51 = vmul.f32 %v2641_v58, %v2601_v50 }
 0x51e   :  { %v2604_v40 = vpop.f32.mrf.mxu1 }
 0x51f   :  { %v2649_v28 = vmul.f32 %v2645_v46, %v2603_v21  ;;  %v2605_v61 = vadd.f32 %v2604_v40, %v2561_v12  ;;  %v2692_v17 = vadd.f32 %v2685_v15, %v2648_v51 }
 0x520   :  { %v2606_v48 = vpop.f32.mrf.mxu1 }
 0x521   :  { %v2652_v52 = vmul.f32 %v2641_v58, %v2605_v61  ;;  %v2607_v25 = vadd.f32 %v2606_v48, %v2563_v4  ;;  %v2693_v14 = vadd.f32 %v2689_v43, %v2649_v28  ;;  %v2700_v26 = vmax.f32 %v2692_v17, 0.0 }
 0x523   :  { %v2696_v62 = vadd.f32 %v2685_v15, %v2652_v52  ;;  %v2653_v9 = vmul.f32 %v2645_v46, %v2607_v25  ;;  %v2701_v32 = vmax.f32 %v2693_v14, 0.0 }
 0x525   :  { %v2697_v11 = vadd.f32 %v2689_v43, %v2653_v9  ;;  %v2704_v5 = vmax.f32 %v2696_v62, 0.0 }
 0x527   :  { %v2705_v27 = vmax.f32 %v2697_v11, 0.0  ;;  %v2708_v18 = vpack.c.bf16 %v2704_v5, %v2700_v26 }
 0x529   :  { %v2709_v24 = vpack.c.bf16 %v2705_v27, %v2701_v32 }
 0x52b   :  { %3046 = vmatprep.mubr.bf16.mxu0 %v2709_v24 }
 0x52c   :  { %3047 = vmatmul.mubr.bf16.vlgmr.msra.gmra.mxu0 %v2708_v18 }
 0x5ac   :  { %v3377_v49 = vpop.f32.mrf.mxu0 }
 0x5ae   :  { %v3378_v44 = vpop.f32.mrf.mxu0 }
 0x5af   :  { %v3379_v38 = vadd.f32 %v3378_v44, %v3377_v49 }
 0x5b0   :  { %v3380_v30 = vpop.f32.mrf.mxu0 }
 0x5b1   :  { %v3008_v10 = vadd.f32 %v3379_v38, %v3273_v7 }
 0x5b2   :  { %v3381_v37 = vpop.f32.mrf.mxu0 }
 0x5b3   :  { %v3382_v55 = vadd.f32 %v3381_v37, %v3380_v30 }
 0x5b5   :  { %v3011_v33 = vadd.f32 %v3382_v55, %v3273_v7 }
 0x5ec   :  { %v3399_v47 = vpop.f32.mrf.mxu0 }
 0x5ee   :  { %v3400_v56 = vpop.f32.mrf.mxu0 }
 0x5ef   :  { %v3401_v6 = vadd.f32 %v3400_v56, %v3399_v47 }
 0x5f0   :  { %v3402_v31 = vpop.f32.mrf.mxu0 }
 0x5f1   :  { %v3049_v41 = vadd.f32 %v3401_v6, %v3008_v10 }
 0x5f2   :  { %v3403_v34 = vpop.f32.mrf.mxu0 }
 0x5f3   :  { %3055 = vst [vmem:[#allocation13] sm:$0xff] %v3049_v41  ;;  %v3404_v22 = vadd.f32 %v3403_v34, %v3402_v31 }
 0x5f5   :  { %v3052_v16 = vadd.f32 %v3404_v22, %v3011_v33 }
 0x5f7   :  { %3056 = vst [vmem:[#allocation13 + $0x8] sm:$0xff] %v3052_v16 }
 0x5f8   :  { %3884 = shalt.err (!%p3881_p6)
}
 0x5f9   :  { %3068 = dma.vmem_to_hbm [thread:$0]  %s3063_s30, 256, %s4616_s13, [#allocation4], %s3907_s18, %s3907_s18, %s3908_s19  }
 0x5fa   :  { %3901 = dma.done.wait [#allocation4], 256  }
 0x5fb   :  { %3902 = vsyncadd [#allocation4], 4294967040 }
 0x5fc   :  { %3072 = vsyncpa [#allocation3], 1 }
 0x5fd   :  { %3073 = vsyncpa [#allocation6], 1 }
 0x5fe   :  { %3074 = vsyncpa [#allocation9], 1 }
 0x5ff   :  { %3075 = vsyncpa [#allocation12], 1 }
 0x600   :  { %3076 = vsyncpa [#allocation4], 1 }

</bundles_post_ra>
